<compile_context>
chip_gen: v5e
topology: v5e:2x2
jax: 0.10.0
libtpu: 0.0.40
codegen_flags: <defaults>
</compile_context>

<pallas_src>
import math

import jax
import jax.numpy as jnp
from jax.experimental import pallas as pl
from jax.experimental.pallas import tpu as pltpu


_LANES = 128      # vreg lane width; also the row-fold factor
_SUBLANES = 8


def _round_up(x, m):
    return -(-x // m) * m


def _gaussian_kernel(emb_ref, mu_ref, w_ref, sel_ref, out_ref):
    """One grid step.

    emb_ref : (tile_r, dw)  folded rows, dw = d * 128 lanes      (emb dtype)
    mu_ref  : (1, dw)       mu tiled across the 128 row groups   (f32)
    w_ref   : (1, dw)       -0.5 * inv_sigma**2, tiled           (f32)
    sel_ref : (dw, 128)     block-diagonal 0/1 selector          (bf16)
    out_ref : (tile_r, 128) per-row sums, lane-dense             (emb dtype)
    """
    x = emb_ref[...].astype(jnp.float32)
    diff = x - mu_ref[...]
    z = diff * diff * w_ref[...]              # f32; every summand has the same sign

    # Exact bf16 hi/lo split -> two single-pass bf16 MXU matmuls against the
    # 0/1 selector (exact in bf16).  This keeps ~f32 accuracy while avoiding
    # both the multi-pass f32 MXU path and the XLU segmented reduction.
    z_hi = z.astype(jnp.bfloat16)
    z_lo = (z - z_hi.astype(jnp.float32)).astype(jnp.bfloat16)

    sel = sel_ref[...]
    acc = jnp.dot(z_hi, sel, preferred_element_type=jnp.float32)
    acc = acc + jnp.dot(z_lo, sel, preferred_element_type=jnp.float32)
    out_ref[...] = acc.astype(out_ref.dtype)


def gaussian_component(emb, mu, inv_sigma, *, block_bytes=4 << 20):
    """emb: (..., d); mu, inv_sigma: (1, d) or (d,). Returns (..., 1)."""
    d = emb.shape[-1]
    lead_shape = emb.shape[:-1]
    n = math.prod(lead_shape) if lead_shape else 1

    mu = jnp.asarray(mu).reshape(1, d).astype(jnp.float32)
    inv_sigma = jnp.asarray(inv_sigma).reshape(1, d).astype(jnp.float32)

    if d > _LANES:
        # Selector matrix would exceed a sensible VMEM budget; let XLA fuse it.
        # TODO(synk): add a K-tiled kernel path for very large feature dims.
        return gaussian_component_ref(emb, mu, inv_sigma).astype(emb.dtype)

    fold = _LANES                      # original rows packed per folded row
    dw = d * fold                      # lanes per folded row (always % 128 == 0)

    w = -0.5 * jnp.square(inv_sigma)   # (1, d) f32
    mu_t = jnp.tile(mu, (1, fold))     # (1, dw)
    w_t = jnp.tile(w, (1, fold))       # (1, dw)

    # Block-diagonal selector: column f sums the d features of row-group f.
    sel = (jnp.arange(dw, dtype=jnp.int32) // d)[:, None] == jnp.arange(
        fold, dtype=jnp.int32)[None, :]
    sel = sel.astype(jnp.bfloat16)     # 0/1 are exact in bf16

    emb2d = emb.reshape(n, d)

    # Row tiling: ~block_bytes of emb per grid step (default 4 MiB), rounded to
    # the 8-sublane granularity.  No artificial grid splitting: large N still
    # yields many steps for v7x's two cores; small N runs in one step.
    bytes_per_frow = dw * 4
    tile_r = max(_SUBLANES,
                 (block_bytes // bytes_per_frow) // _SUBLANES * _SUBLANES)
    rows_needed = _round_up(n, fold) // fold
    tile_r = min(tile_r, _round_up(rows_needed, _SUBLANES))
    rows_pad = _round_up(rows_needed, tile_r)
    n_pad = rows_pad * fold

    if n_pad != n:
        emb2d = jnp.pad(emb2d, ((0, n_pad - n), (0, 0)))
    emb_folded = emb2d.reshape(rows_pad, dw)     # zero-cost row-major fold

    out2d = pl.pallas_call(
        _gaussian_kernel,
        out_shape=jax.ShapeDtypeStruct((rows_pad, fold), emb.dtype),
        grid_spec=pltpu.PrefetchScalarGridSpec(
            num_scalar_prefetch=0,
            grid=(rows_pad // tile_r,),
            in_specs=[
                pl.BlockSpec((tile_r, dw), lambda i: (i, 0)),  # emb (streamed)
                pl.BlockSpec((1, dw), lambda i: (0, 0)),       # mu  (resident)
                pl.BlockSpec((1, dw), lambda i: (0, 0)),       # w   (resident)
                pl.BlockSpec((dw, fold), lambda i: (0, 0)),    # sel (resident)
            ],
            out_specs=pl.BlockSpec((tile_r, fold), lambda i: (i, 0)),
        ),
        compiler_params=pltpu.CompilerParams(
            dimension_semantics=("parallel",),
            vmem_limit_bytes=40 * 1024 * 1024,
        ),
    )(emb_folded, mu_t, w_t, sel)

    # out2d[R, f] is the result for original row R*128 + f  ->  plain reshape
    # recovers the original order; zero-padded rows are sliced off.
    out = out2d.reshape(n_pad, 1)[:n]
    return out.reshape(lead_shape + (1,))


def gaussian_component_ref(emb, mu, inv_sigma):
    e = -0.5 * jnp.square(emb - mu)
    e = e * jnp.square(inv_sigma)
    return jnp.sum(e, axis=-1, keepdims=True)


if __name__ == "__main__":
    key = jax.random.PRNGKey(0)

    # (leading shape, d, kwargs): STPGCN-like small case, a non-divisible row
    # count (padding path), a d that does not divide 128, a tiny d, and a
    # shrunken block size that forces a multi-step grid.
    cases = [
        ((2, 16), 32, {}),
        ((3, 37), 32, {}),
        ((2, 8), 48, {}),
        ((4, 9), 8, {}),
        ((40, 40), 32, {"block_bytes": 1 << 15}),
    ]

    ok = True
    for lead, d, kwargs in cases:
        key, k_emb, k_mu, k_sig = jax.random.split(key, 4)
        emb = jax.random.normal(k_emb, lead + (d,), dtype=jnp.float32)
        mu = jax.random.normal(k_mu, (1, d), dtype=jnp.float32)
        inv_sigma = jax.random.normal(k_sig, (1, d), dtype=jnp.float32)

        out = jax.block_until_ready(gaussian_component(emb, mu, inv_sigma, **kwargs))
        ref = gaussian_component_ref(emb, mu, inv_sigma)

        assert out.shape == lead + (1,), f"bad shape {out.shape} for {lead}, d={d}"
        assert jnp.allclose(out, ref, atol=1e-4, rtol=5e-4), \
            f"mismatch vs reference for {lead}, d={d}"

    print("KERNEL_OK")
</pallas_src>

<mosaic_0001>
module attributes {stable_mosaic.version = 11 : i64} {
  func.func @_gaussian_kernel(%arg0: i32, %arg1: memref<8x4096xf32, #tpu.memory_space<vmem>>, %arg2: memref<1x4096xf32, #tpu.memory_space<vmem>>, %arg3: memref<1x4096xf32, #tpu.memory_space<vmem>>, %arg4: memref<4096x128xbf16, #tpu.memory_space<vmem>>, %arg5: memref<8x128xf32, #tpu.memory_space<vmem>>) attributes {dimension_semantics = [#tpu.dimension_semantics<parallel>], iteration_bounds = array<i64: 1>, scalar_prefetch = 0 : i64, scratch_operands = 0 : i64, tpu.core_type = #tpu.core_type<tc>, window_params = [{transform_indices = @transform_0, window_bounds = array<i64: 8, 4096>}, {pipeline_mode = #tpu.pipeline_mode<synchronous>, transform_indices = @transform_1, window_bounds = array<i64: 1, 4096>}, {pipeline_mode = #tpu.pipeline_mode<synchronous>, transform_indices = @transform_2, window_bounds = array<i64: 1, 4096>}, {pipeline_mode = #tpu.pipeline_mode<synchronous>, transform_indices = @transform_3, window_bounds = array<i64: 4096, 128>}, {transform_indices = @transform_4, window_bounds = array<i64: 8, 128>}]} {
    %c0 = arith.constant 0 : index
    %c0_0 = arith.constant 0 : index
    %0 = vector.load %arg1[%c0, %c0_0] : memref<8x4096xf32, #tpu.memory_space<vmem>>, vector<8x4096xf32>
    %c0_1 = arith.constant 0 : index
    %c0_2 = arith.constant 0 : index
    %1 = vector.load %arg2[%c0_1, %c0_2] : memref<1x4096xf32, #tpu.memory_space<vmem>>, vector<1x4096xf32>
    %2 = vector.broadcast %1 : vector<1x4096xf32> to vector<8x4096xf32>
    %3 = arith.subf %0, %2 : vector<8x4096xf32>
    %4 = arith.mulf %3, %3 : vector<8x4096xf32>
    %c0_3 = arith.constant 0 : index
    %c0_4 = arith.constant 0 : index
    %5 = vector.load %arg3[%c0_3, %c0_4] : memref<1x4096xf32, #tpu.memory_space<vmem>>, vector<1x4096xf32>
    %6 = vector.broadcast %5 : vector<1x4096xf32> to vector<8x4096xf32>
    %7 = arith.mulf %4, %6 : vector<8x4096xf32>
    %8 = arith.truncf %7 : vector<8x4096xf32> to vector<8x4096xbf16>
    %9 = arith.extf %8 : vector<8x4096xbf16> to vector<8x4096xf32>
    %10 = arith.subf %7, %9 : vector<8x4096xf32>
    %11 = arith.truncf %10 : vector<8x4096xf32> to vector<8x4096xbf16>
    %c0_5 = arith.constant 0 : index
    %c0_6 = arith.constant 0 : index
    %12 = vector.load %arg4[%c0_5, %c0_6] : memref<4096x128xbf16, #tpu.memory_space<vmem>>, vector<4096x128xbf16>
    %cst = arith.constant dense<0.000000e+00> : vector<8x128xf32>
    %13 = tpu.matmul %8, %12, %cst {dimension_numbers = #tpu.dot_dimension_numbers<[1], [0], [0], [1], [0, 0, 1, 1], [], []>} : vector<8x4096xbf16>, vector<4096x128xbf16>, vector<8x128xf32> -> vector<8x128xf32>
    %cst_7 = arith.constant dense<0.000000e+00> : vector<8x128xf32>
    %14 = tpu.matmul %11, %12, %cst_7 {dimension_numbers = #tpu.dot_dimension_numbers<[1], [0], [0], [1], [0, 0, 1, 1], [], []>} : vector<8x4096xbf16>, vector<4096x128xbf16>, vector<8x128xf32> -> vector<8x128xf32>
    %15 = arith.addf %13, %14 : vector<8x128xf32>
    %c0_8 = arith.constant 0 : index
    %c0_9 = arith.constant 0 : index
    %16 = vector.load %arg5[%c0_8, %c0_9] : memref<8x128xf32, #tpu.memory_space<vmem>>, vector<8x128xf32>
    tpu.vector_store %arg5[%c0_8, %c0_9], %15 {strides = array<i32>} : memref<8x128xf32, #tpu.memory_space<vmem>>, vector<8x128xf32>,
    return
  }
  func.func @transform_0(%arg0: i32) -> (i32, i32) {
    %c0_i32 = arith.constant 0 : i32
    %c0_i32_0 = arith.constant 0 : i32
    return %arg0, %c0_i32 : i32, i32
  }
  func.func @transform_1(%arg0: i32) -> (i32, i32) {
    %c0_i32 = arith.constant 0 : i32
    %c0_i32_0 = arith.constant 0 : i32
    %c0_i32_1 = arith.constant 0 : i32
    return %c0_i32, %c0_i32_0 : i32, i32
  }
  func.func @transform_2(%arg0: i32) -> (i32, i32) {
    %c0_i32 = arith.constant 0 : i32
    %c0_i32_0 = arith.constant 0 : i32
    %c0_i32_1 = arith.constant 0 : i32
    return %c0_i32, %c0_i32_0 : i32, i32
  }
  func.func @transform_3(%arg0: i32) -> (i32, i32) {
    %c0_i32 = arith.constant 0 : i32
    %c0_i32_0 = arith.constant 0 : i32
    %c0_i32_1 = arith.constant 0 : i32
    return %c0_i32, %c0_i32_0 : i32, i32
  }
  func.func @transform_4(%arg0: i32) -> (i32, i32) {
    %c0_i32 = arith.constant 0 : i32
    %c0_i32_0 = arith.constant 0 : i32
    return %arg0, %c0_i32 : i32, i32
  }
}

</mosaic_0001>

<bundles_post_ra>
// kernel: tpu_custom_call.1
= control target key start
LH: loop header
LB: loop body
LE: loop exit
PB: predicated region body
PF: predicated region fallthrough
CT: control target
= control target key end

     0   :  { %9 = vsyncpa [#allocation3], 0  ;;  %s5473_s0 = inlined_call_operand.hbm [shape: f32[8,4096], index: 0, kind: input, shape index: {}]   ;;  %s5474_s1 = inlined_call_operand.hbm [shape: f32[1,4096], index: 1, kind: input, shape index: {}]   ;;  %s5475_s2 = inlined_call_operand.hbm [shape: f32[1,4096], index: 2, kind: input, shape index: {}]   ;;  %s5476_s3 = inlined_call_operand.hbm [shape: bf16[4096,128], index: 3, kind: input, shape index: {}]   ;;  %s5477_s4 = inlined_call_operand.hbm [shape: f32[8,128], index: 4, kind: output, shape index: {}]  }
   0x1   :  { %10 = vsyncpa [#allocation6], 0 }
   0x2   :  { %11 = vsyncpa [#allocation9], 0  ;;  %s29_s17 = sshll.u32 %s5474_s1, 4  ;;  %s30_s17 = int_to_ptr.hbm [resolvable:$true] %s29_s17 }
   0x3   :  { %12 = vsyncpa [#allocation4], 0  ;;  %s5115_s18 = smov [#allocation5]   ;;  %s18_s22 = sshll.u32 %s5473_s0, 4  ;;  %s19_s22 = int_to_ptr.hbm [resolvable:$true] %s18_s22 }
   0x4   :  { %s31_s19 = sshll.u32 %s5115_s18, 4  ;;  %s5116_s23 = smov [#allocation2]   ;;  %s32_s19 = int_to_ptr.vmem [resolvable:$true] %s31_s19 }
   0x5   :  { %34 = dma.hbm_to_vmem [thread:$0]  %s30_s17, 512, %s32_s19, [#allocation6]  }
   0x6   :  { %s20_s24 = sshll.u32 %s5116_s23, 4  ;;  %s40_s27 = sshll.u32 %s5475_s2, 4  ;;  %s21_s24 = int_to_ptr.vmem [resolvable:$true] %s20_s24  ;;  %s41_s27 = int_to_ptr.hbm [resolvable:$true] %s40_s27 }
   0x7   :  { %23 = dma.hbm_to_vmem [thread:$0]  %s19_s22, 4096, %s21_s24, [#allocation3]  }
   0x8   :  { %s50_s29 = sshll.u32 %s5476_s3, 4  ;;  %s5117_s30 = smov [#allocation7]   ;;  %s51_s29 = int_to_ptr.hbm [resolvable:$true] %s50_s29 }
   0x9   :  { %s42_s5 = sshll.u32 %s5117_s30, 4  ;;  %s5118_s0 = smov [#allocation8]   ;;  %s43_s5 = int_to_ptr.vmem [resolvable:$true] %s42_s5 }
   0xa   :  { %45 = dma.hbm_to_vmem [thread:$0]  %s41_s27, 512, %s43_s5, [#allocation6]  }
   0xb   :  { %s52_s6 = sshll.u32 %s5118_s0, 4  ;;  %s5119_s7 = smov 64   ;;  %s53_s6 = int_to_ptr.vmem [resolvable:$true] %s52_s6 }
   0xc   :  { %s5120_s8 = smov 4  }
   0xd   :  { %58 = dma.hbm_to_vmem [thread:$0]  %s51_s29, 32768, %s53_s6, [#allocation9], %s5119_s7, %s5119_s7, %s5120_s8  }
   0xe   :  { %5107 = dma.done.wait [#allocation3], 4096  }
   0xf   :  { %5108 = vsyncadd [#allocation3], 4294963200 }
  0x10   :  { %5109 = dma.done.wait [#allocation6], 1024  }
  0x11   :  { %5110 = vsyncadd [#allocation6], 4294966272 }
  0x12   :  { %5111 = dma.done.wait [#allocation9], 32768  }
  0x13   :  { %5112 = vsyncadd [#allocation9], 4294934528  ;;  %v4502_v0 = vld [vmem:[#allocation8 + $0x38] sm:$0xff]  ;;  %v4501_v4 = vld [vmem:[#allocation8 + $0x30] sm:$0xff]  ;;  %s5121_s2 = smov [#allocation10]   ;;  %s3459_s11 = sshll.u32 %s5477_s4, 4  ;;  %s3460_s11 = int_to_ptr.hbm [resolvable:$true] %s3459_s11 }
  0x14   :  { %v4510_v1 = vld [vmem:[#allocation8 + $0x78] sm:$0xff]  ;;  %2507 = vmatpush.bf16.msra.mxu0 %v4502_v0  ;;  %v4509_v5 = vld [vmem:[#allocation8 + $0x70] sm:$0xff]  ;;  %v4500_v8 = vld [vmem:[#allocation8 + $0x28] sm:$0xff]  ;;  %s3457_s3 = sshll.u32 %s5121_s2, 4  ;;  %s3458_s3 = int_to_ptr.vmem [resolvable:$true] %s3457_s3 }
  0x15   :  { %v4518_v2 = vld [vmem:[#allocation8 + $0xb8] sm:$0xff]  ;;  %2520 = vmatpush.bf16.msra.mxu1 %v4510_v1  ;;  %v4517_v6 = vld [vmem:[#allocation8 + $0xb0] sm:$0xff]  ;;  %v4508_v9 = vld [vmem:[#allocation8 + $0x68] sm:$0xff] }
  0x16   :  { %v4526_v3 = vld [vmem:[#allocation8 + $0xf8] sm:$0xff]  ;;  %2533 = vmatpush.bf16.msra.mxu2 %v4518_v2  ;;  %v4525_v7 = vld [vmem:[#allocation8 + $0xf0] sm:$0xff]  ;;  %v4516_v10 = vld [vmem:[#allocation8 + $0xa8] sm:$0xff] }
  0x17   :  { %2546 = vmatpush.bf16.msra.mxu3 %v4526_v3  ;;  %v4524_v11 = vld [vmem:[#allocation8 + $0xe8] sm:$0xff]  ;;  %v4499_v12 = vld [vmem:[#allocation8 + $0x20] sm:$0xff]  ;;  %v4498_v16 = vld [vmem:[#allocation8 + $0x18] sm:$0xff] }
  0x18   :  { %2508 = vmatpush.bf16.msra.mxu0 %v4501_v4  ;;  %v4507_v13 = vld [vmem:[#allocation8 + $0x60] sm:$0xff]  ;;  %v4506_v17 = vld [vmem:[#allocation8 + $0x58] sm:$0xff]  ;;  %v4497_v20 = vld [vmem:[#allocation8 + $0x10] sm:$0xff] }
  0x19   :  { %2521 = vmatpush.bf16.msra.mxu1 %v4509_v5  ;;  %v4515_v14 = vld [vmem:[#allocation8 + $0xa0] sm:$0xff]  ;;  %v4514_v18 = vld [vmem:[#allocation8 + $0x98] sm:$0xff]  ;;  %v4505_v21 = vld [vmem:[#allocation8 + $0x50] sm:$0xff] }
  0x1a   :  { %2534 = vmatpush.bf16.msra.mxu2 %v4517_v6  ;;  %v4523_v15 = vld [vmem:[#allocation8 + $0xe0] sm:$0xff]  ;;  %v4522_v19 = vld [vmem:[#allocation8 + $0xd8] sm:$0xff]  ;;  %v77_v22 = vld [vmem:[#allocation2 + $0x10] sm:$0xff] }
  0x1b   :  { %2547 = vmatpush.bf16.msra.mxu3 %v4525_v7  ;;  %v78_v23 = vld [vmem:[#allocation2 + $0x18] sm:$0xff]  ;;  %v5159_v24 = vld [vmem:[#allocation5] sm:$0xff]  ;;  %v4513_v26 = vld [vmem:[#allocation8 + $0x90] sm:$0xff] }
  0x1c   :  { %2509 = vmatpush.bf16.msra.mxu0 %v4500_v8  ;;  %v5161_v25 = vld [vmem:[#allocation7] sm:$0xff]  ;;  %v4521_v27 = vld [vmem:[#allocation8 + $0xd0] sm:$0xff]  ;;  %v117_v28 = vperm.slane %v5159_v24, 2  ;;  %v118_v29 = vperm.slane %v5159_v24, 3  ;;  %v76_v31 = vld [vmem:[#allocation2 + $0x8] sm:$0xff]  ;;  %v115_v32 = vperm.slane %v5159_v24, 0 }
  0x1d   :  { %2522 = vmatpush.bf16.msra.mxu1 %v4508_v9  ;;  %v75_v30 = vld [vmem:[#allocation2] sm:$0xff]  ;;  %v116_v33 = vperm.slane %v5159_v24, 1  ;;  %v253_v36 = vperm.slane %v5161_v25, 2  ;;  %v254_v37 = vperm.slane %v5161_v25, 3  ;;  %v4496_v38 = vld [vmem:[#allocation8 + $0x8] sm:$0xff]  ;;  %v251_v42 = vperm.slane %v5161_v25, 0 }
  0x1e   :  { %2535 = vmatpush.bf16.msra.mxu2 %v4516_v10  ;;  %v181_v34 = vsub.f32 %v77_v22, %v117_v28  ;;  %v182_v35 = vsub.f32 %v78_v23, %v118_v29  ;;  %v4504_v39 = vld [vmem:[#allocation8 + $0x48] sm:$0xff]  ;;  %v179_v40 = vsub.f32 %v75_v30, %v115_v32  ;;  %v252_v43 = vperm.slane %v5161_v25, 1  ;;  %v4495_v52 = vld [vmem:[#allocation8] sm:$0xff]  ;;  %v4534_v59 = vld [vmem:[#allocation8 + $0x138] sm:$0xff] }
  0x1f   :  { %2548 = vmatpush.bf16.msra.mxu3 %v4524_v11  ;;  %v180_v41 = vsub.f32 %v76_v31, %v116_v33  ;;  %v4512_v44 = vld [vmem:[#allocation8 + $0x88] sm:$0xff]  ;;  %v4503_v53 = vld [vmem:[#allocation8 + $0x40] sm:$0xff]  ;;  %v4542_v60 = vld [vmem:[#allocation8 + $0x178] sm:$0xff]  ;;  %v121_v8 = vperm.slane %v5159_v24, 6  ;;  %v122_v9 = vperm.slane %v5159_v24, 7 }
  0x20   :  { %2510 = vmatpush.bf16.msra.mxu0 %v4499_v12  ;;  %v4520_v45 = vld [vmem:[#allocation8 + $0xc8] sm:$0xff]  ;;  %v213_v46 = vmul.f32 %v181_v34, %v181_v34  ;;  %v214_v47 = vmul.f32 %v182_v35, %v182_v35  ;;  %v211_v48 = vmul.f32 %v179_v40, %v179_v40  ;;  %v4511_v56 = vld [vmem:[#allocation8 + $0x80] sm:$0xff]  ;;  %v4550_v62 = vld [vmem:[#allocation8 + $0x1b8] sm:$0xff]  ;;  %v257_v35 = vperm.slane %v5161_v25, 6 }
  0x21   :  { %2523 = vmatpush.bf16.msra.mxu1 %v4507_v13  ;;  %v212_v49 = vmul.f32 %v180_v41, %v180_v41  ;;  %v4519_v57 = vld [vmem:[#allocation8 + $0xc0] sm:$0xff]  ;;  %v4558_v63 = vld [vmem:[#allocation8 + $0x1f8] sm:$0xff]  ;;  %v4533_v4 = vld [vmem:[#allocation8 + $0x130] sm:$0xff]  ;;  %v255_v41 = vperm.slane %v5161_v25, 4 }
  0x22   :  { %2536 = vmatpush.bf16.msra.mxu2 %v4515_v14  ;;  %v317_v50 = vmul.f32 %v253_v36, %v213_v46  ;;  %v318_v51 = vmul.f32 %v254_v37, %v214_v47  ;;  %v315_v54 = vmul.f32 %v251_v42, %v211_v48  ;;  %v4541_v5 = vld [vmem:[#allocation8 + $0x170] sm:$0xff]  ;;  %v82_v14 = vld [vmem:[#allocation2 + $0x38] sm:$0xff]  ;;  %v4532_v28 = vld [vmem:[#allocation8 + $0x128] sm:$0xff]  ;;  %v258_v36 = vperm.slane %v5161_v25, 7 }
  0x23   :  { %2549 = vmatpush.bf16.msra.mxu3 %v4523_v15  ;;  %v316_v55 = vmul.f32 %v252_v43, %v212_v49  ;;  %v4549_v10 = vld [vmem:[#allocation8 + $0x1b0] sm:$0xff]  ;;  %v119_v15 = vperm.slane %v5159_v24, 4  ;;  %v4540_v29 = vld [vmem:[#allocation8 + $0x168] sm:$0xff]  ;;  %v4531_v37 = vld [vmem:[#allocation8 + $0x120] sm:$0xff]  ;;  %v256_v42 = vperm.slane %v5161_v25, 5 }
  0x24   :  { %2511 = vmatpush.bf16.msra.mxu0 %v4498_v16  ;;  %v5171_v58 = vpack.c.bf16 %v318_v51, %v317_v50  ;;  %v81_v13 = vld [vmem:[#allocation2 + $0x30] sm:$0xff]  ;;  %v120_v16 = vperm.slane %v5159_v24, 5  ;;  %v4548_v24 = vld [vmem:[#allocation8 + $0x1a8] sm:$0xff]  ;;  %v4547_v43 = vld [vmem:[#allocation8 + $0x1a0] sm:$0xff] }
  0x25   :  { %2524 = vmatpush.bf16.msra.mxu1 %v4506_v17  ;;  %v5173_v61 = vpack.c.bf16 %v316_v55, %v315_v54  ;;  %v4557_v17 = vld [vmem:[#allocation8 + $0x1f0] sm:$0xff]  ;;  %v4556_v32 = vld [vmem:[#allocation8 + $0x1e8] sm:$0xff]  ;;  %v4530_v46 = vld [vmem:[#allocation8 + $0x118] sm:$0xff] }
  0x26   :  { %2537 = vmatpush.bf16.msra.mxu2 %v4514_v18  ;;  %v365_v0 = vunpack.c.l.bf16 %v5171_v58  ;;  %v366_v1 = vunpack.c.h.bf16 %v5171_v58  ;;  %v4538_v47 = vld [vmem:[#allocation8 + $0x158] sm:$0xff]  ;;  %v4537_v25 = vld [vmem:[#allocation8 + $0x150] sm:$0xff] }
  0x27   :  { %2550 = vmatpush.bf16.msra.mxu3 %v4522_v19  ;;  %v363_v2 = vunpack.c.l.bf16 %v5173_v61  ;;  %v364_v3 = vunpack.c.h.bf16 %v5173_v61 }
  0x28   :  { %2512 = vmatpush.bf16.msra.mxu0 %v4497_v20  ;;  %v397_v6 = vsub.f32 %v317_v50, %v365_v0  ;;  %v398_v7 = vsub.f32 %v318_v51, %v366_v1  ;;  %v79_v20 = vld [vmem:[#allocation2 + $0x20] sm:$0xff]  ;;  %v4546_v51 = vld [vmem:[#allocation8 + $0x198] sm:$0xff]  ;;  %v4544_v0 = vld [vmem:[#allocation8 + $0x188] sm:$0xff] }
  0x29   :  { %2525 = vmatpush.bf16.msra.mxu1 %v4505_v21  ;;  %v395_v11 = vsub.f32 %v315_v54, %v363_v2  ;;  %v396_v12 = vsub.f32 %v316_v55, %v364_v3  ;;  %v80_v21 = vld [vmem:[#allocation2 + $0x28] sm:$0xff]  ;;  %v183_v30 = vsub.f32 %v79_v20, %v119_v15  ;;  %v4582_v15 = vld [vmem:[#allocation8 + $0x2b8] sm:$0xff]  ;;  %v4573_v20 = vld [vmem:[#allocation8 + $0x270] sm:$0xff] }
  0x2a   :  { %2538 = vmatpush.bf16.msra.mxu2 %v4513_v26  ;;  %v429_v18 = vpack.c.bf16 %v397_v6, %v397_v6  ;;  %v430_v19 = vpack.c.bf16 %v398_v7, %v398_v7  ;;  %v185_v26 = vsub.f32 %v81_v13, %v121_v8  ;;  %v184_v31 = vsub.f32 %v80_v21, %v120_v16  ;;  %v4552_v1 = vld [vmem:[#allocation8 + $0x1c8] sm:$0xff]  ;;  %v4543_v8 = vld [vmem:[#allocation8 + $0x180] sm:$0xff]  ;;  %v4574_v13 = vld [vmem:[#allocation8 + $0x278] sm:$0xff] }
  0x2b   :  { %2551 = vmatpush.bf16.msra.mxu3 %v4521_v27  ;;  %v427_v22 = vpack.c.bf16 %v395_v11, %v395_v11  ;;  %v428_v23 = vpack.c.bf16 %v396_v12, %v396_v12  ;;  %v186_v27 = vsub.f32 %v82_v14, %v122_v9  ;;  %v4551_v9 = vld [vmem:[#allocation8 + $0x1c0] sm:$0xff]  ;;  %v4566_v12 = vld [vmem:[#allocation8 + $0x238] sm:$0xff]  ;;  %v5195_v14 = vld [vmem:[#allocation5 + $0x8] sm:$0xff] }
  0x2c   :  { %2513 = vmatpush.bf16.msra.mxu0 %v4496_v38  ;;  %v217_v33 = vmul.f32 %v185_v26, %v185_v26  ;;  %v4539_v38 = vld [vmem:[#allocation8 + $0x160] sm:$0xff]  ;;  %v216_v40 = vmul.f32 %v184_v31, %v184_v31  ;;  %v4590_v16 = vld [vmem:[#allocation8 + $0x2f8] sm:$0xff]  ;;  %v124_v26 = vperm.slane %v5195_v14, 1  ;;  %v126_v31 = vperm.slane %v5195_v14, 3 }
  0x2d   :  { %2526 = vmatpush.bf16.msra.mxu1 %v4504_v39  ;;  %v218_v34 = vmul.f32 %v186_v27, %v186_v27  ;;  %v215_v39 = vmul.f32 %v183_v30, %v183_v30  ;;  %v4581_v27 = vld [vmem:[#allocation8 + $0x2b0] sm:$0xff]  ;;  %v125_v30 = vperm.slane %v5195_v14, 2 }
  0x2e   :  { %2539 = vmatpush.bf16.msra.mxu2 %v4512_v44  ;;  %v4555_v44 = vld [vmem:[#allocation8 + $0x1e0] sm:$0xff]  ;;  %v320_v50 = vmul.f32 %v256_v42, %v216_v40  ;;  %v4588_v42 = vld [vmem:[#allocation8 + $0x2e8] sm:$0xff] }
  0x2f   :  { %2552 = vmatpush.bf16.msra.mxu3 %v4520_v45  ;;  %v321_v45 = vmul.f32 %v257_v35, %v217_v33  ;;  %v322_v48 = vmul.f32 %v258_v36, %v218_v34  ;;  %v319_v49 = vmul.f32 %v255_v41, %v215_v39  ;;  %v86_v33 = vld [vmem:[#allocation2 + $0x58] sm:$0xff]  ;;  %v4564_v36 = vld [vmem:[#allocation8 + $0x228] sm:$0xff] }
  0x30   :  { %2514 = vmatpush.bf16.msra.mxu0 %v4495_v52  ;;  %v4554_v52 = vld [vmem:[#allocation8 + $0x1d8] sm:$0xff]  ;;  %v190_v40 = vsub.f32 %v86_v33, %v126_v31  ;;  %v4580_v41 = vld [vmem:[#allocation8 + $0x2a8] sm:$0xff] }
  0x31   :  { %2527 = vmatpush.bf16.msra.mxu1 %v4503_v53  ;;  %v4529_v53 = vld [vmem:[#allocation8 + $0x110] sm:$0xff]  ;;  %v5187_v54 = vpack.c.bf16 %v322_v48, %v321_v45  ;;  %v5189_v55 = vpack.c.bf16 %v320_v50, %v319_v49 }
  0x32   :  { %2540 = vmatpush.bf16.msra.mxu2 %v4511_v56  ;;  %v4545_v56 = vld [vmem:[#allocation8 + $0x190] sm:$0xff] }
  0x33   :  { %2553 = vmatpush.bf16.msra.mxu3 %v4519_v57  ;;  %2515 = vmatmul.bf16.vlgmr.msra.gmra.mxu0 %v427_v22  ;;  %v4553_v57 = vld [vmem:[#allocation8 + $0x1d0] sm:$0xff]  ;;  %v370_v2 = vunpack.c.h.bf16 %v5187_v54  ;;  %v368_v3 = vunpack.c.h.bf16 %v5189_v55 }
  0x34   :  { %2559 = vmatpush.bf16.msrb.mxu0 %v4534_v59  ;;  %2528 = vmatmul.bf16.vlgmr.msra.gmra.mxu1 %v428_v23  ;;  %v4528_v59 = vld [vmem:[#allocation8 + $0x108] sm:$0xff]  ;;  %v123_v23 = vperm.slane %v5195_v14, 0 }
  0x35   :  { %2572 = vmatpush.bf16.msrb.mxu1 %v4542_v60  ;;  %2541 = vmatmul.bf16.vlgmr.msra.gmra.mxu2 %v429_v18  ;;  %v4536_v60 = vld [vmem:[#allocation8 + $0x148] sm:$0xff]  ;;  %v400_v11 = vsub.f32 %v320_v50, %v368_v3  ;;  %v222_v50 = vmul.f32 %v190_v40, %v190_v40  ;;  %v4569_v3 = vld [vmem:[#allocation8 + $0x250] sm:$0xff]  ;;  %v87_v40 = vld [vmem:[#allocation2 + $0x60] sm:$0xff] }
  0x36   :  { %2585 = vmatpush.bf16.msrb.mxu2 %v4550_v62  ;;  %2554 = vmatmul.bf16.vlgmr.msra.gmra.mxu3 %v430_v19  ;;  %v369_v62 = vunpack.c.l.bf16 %v5187_v54  ;;  %v4565_v19 = vld [vmem:[#allocation8 + $0x230] sm:$0xff] }
  0x37   :  { %2598 = vmatpush.bf16.msrb.mxu3 %v4558_v63  ;;  %v367_v63 = vunpack.c.l.bf16 %v5189_v55  ;;  %v432_v22 = vpack.c.bf16 %v400_v11, %v400_v11 }
  0x38   :  { %2560 = vmatpush.bf16.msrb.mxu0 %v4533_v4  ;;  %v4527_v4 = vld [vmem:[#allocation8 + $0x100] sm:$0xff]  ;;  %v401_v6 = vsub.f32 %v321_v45, %v369_v62 }
  0x39   :  { %2573 = vmatpush.bf16.msrb.mxu1 %v4541_v5  ;;  %v4535_v5 = vld [vmem:[#allocation8 + $0x140] sm:$0xff]  ;;  %v399_v7 = vsub.f32 %v319_v49, %v367_v63 }
  0x3a   :  { %2586 = vmatpush.bf16.msrb.mxu2 %v4549_v10  ;;  %v402_v10 = vsub.f32 %v322_v48, %v370_v2  ;;  %v4571_v48 = vld [vmem:[#allocation8 + $0x260] sm:$0xff]  ;;  %v4561_v2 = vld [vmem:[#allocation8 + $0x210] sm:$0xff] }
  0x3b   :  { %2599 = vmatpush.bf16.msrb.mxu3 %v4557_v17  ;;  %v433_v17 = vpack.c.bf16 %v401_v6, %v401_v6  ;;  %v431_v18 = vpack.c.bf16 %v399_v7, %v399_v7  ;;  %v4577_v6 = vld [vmem:[#allocation8 + $0x290] sm:$0xff] }
  0x3c   :  { %2561 = vmatpush.bf16.msrb.mxu0 %v4532_v28  ;;  %v434_v21 = vpack.c.bf16 %v402_v10, %v402_v10  ;;  %v83_v28 = vld [vmem:[#allocation2 + $0x40] sm:$0xff]  ;;  %v4585_v7 = vld [vmem:[#allocation8 + $0x2d0] sm:$0xff] }
  0x3d   :  { %2574 = vmatpush.bf16.msrb.mxu1 %v4540_v29  ;;  %v84_v29 = vld [vmem:[#allocation2 + $0x48] sm:$0xff]  ;;  %v187_v34 = vsub.f32 %v83_v28, %v123_v23  ;;  %v4606_v28 = vld [vmem:[#allocation8 + $0x378] sm:$0xff] }
  0x3e   :  { %2587 = vmatpush.bf16.msrb.mxu2 %v4548_v24  ;;  %v4589_v24 = vld [vmem:[#allocation8 + $0x2f0] sm:$0xff]  ;;  %v188_v35 = vsub.f32 %v84_v29, %v124_v26  ;;  %v4614_v29 = vld [vmem:[#allocation8 + $0x3b8] sm:$0xff] }
  0x3f   :  { %2600 = vmatpush.bf16.msrb.mxu3 %v4556_v32  ;;  %v85_v32 = vld [vmem:[#allocation2 + $0x50] sm:$0xff] }
  0x40   :  { %2562 = vmatpush.bf16.msrb.mxu0 %v4531_v37  ;;  %v4572_v37 = vld [vmem:[#allocation8 + $0x268] sm:$0xff]  ;;  %v189_v39 = vsub.f32 %v85_v32, %v125_v30  ;;  %v4622_v30 = vld [vmem:[#allocation8 + $0x3f8] sm:$0xff] }
  0x41   :  { %2575 = vmatpush.bf16.msrb.mxu1 %v4539_v38  ;;  %v5201_v38 = vld [vmem:[#allocation7 + $0x8] sm:$0xff] }
  0x42   :  { %2588 = vmatpush.bf16.msrb.mxu2 %v4547_v43  ;;  %v219_v43 = vmul.f32 %v187_v34, %v187_v34  ;;  %v259_v45 = vperm.slane %v5201_v38, 0  ;;  %v221_v49 = vmul.f32 %v189_v39, %v189_v39  ;;  %v4597_v34 = vld [vmem:[#allocation8 + $0x330] sm:$0xff] }
  0x43   :  { %2601 = vmatpush.bf16.msrb.mxu3 %v4555_v44  ;;  %v220_v44 = vmul.f32 %v188_v35, %v188_v35  ;;  %v4605_v35 = vld [vmem:[#allocation8 + $0x370] sm:$0xff] }
  0x44   :  { %2563 = vmatpush.bf16.msrb.mxu0 %v4530_v46  ;;  %v260_v46 = vperm.slane %v5201_v38, 1  ;;  %v4613_v39 = vld [vmem:[#allocation8 + $0x3b0] sm:$0xff] }
  0x45   :  { %2576 = vmatpush.bf16.msrb.mxu1 %v4538_v47  ;;  %v4563_v47 = vld [vmem:[#allocation8 + $0x220] sm:$0xff] }
  0x46   :  { %2589 = vmatpush.bf16.msrb.mxu2 %v4546_v51  ;;  %v261_v51 = vperm.slane %v5201_v38, 2 }
  0x47   :  { %2602 = vmatpush.bf16.msrb.mxu3 %v4554_v52  ;;  %v262_v52 = vperm.slane %v5201_v38, 3 }
  0x48   :  { %2564 = vmatpush.bf16.msrb.mxu0 %v4529_v53  ;;  %v4579_v53 = vld [vmem:[#allocation8 + $0x2a0] sm:$0xff]  ;;  %v325_v62 = vmul.f32 %v261_v51, %v221_v49  ;;  %v4596_v49 = vld [vmem:[#allocation8 + $0x328] sm:$0xff] }
  0x49   :  { %2577 = vmatpush.bf16.msrb.mxu1 %v4537_v25  ;;  %v4587_v25 = vld [vmem:[#allocation8 + $0x2e0] sm:$0xff]  ;;  %v326_v63 = vmul.f32 %v262_v52, %v222_v50  ;;  %v4604_v50 = vld [vmem:[#allocation8 + $0x368] sm:$0xff] }
  0x4a   :  { %2590 = vmatpush.bf16.msrb.mxu2 %v4545_v56  ;;  %v323_v56 = vmul.f32 %v259_v45, %v219_v43  ;;  %v130_v43 = vperm.slane %v5195_v14, 7  ;;  %v89_v45 = vld [vmem:[#allocation2 + $0x70] sm:$0xff] }
  0x4b   :  { %2603 = vmatpush.bf16.msrb.mxu3 %v4553_v57  ;;  %v4562_v57 = vld [vmem:[#allocation8 + $0x218] sm:$0xff] }
  0x4c   :  { %2565 = vmatpush.bf16.msrb.mxu0 %v4528_v59  ;;  %v4570_v59 = vld [vmem:[#allocation8 + $0x258] sm:$0xff] }
  0x4d   :  { %2578 = vmatpush.bf16.msrb.mxu1 %v4536_v60  ;;  %v324_v60 = vmul.f32 %v260_v46, %v220_v44  ;;  %v4621_v44 = vld [vmem:[#allocation8 + $0x3f0] sm:$0xff]  ;;  %v90_v46 = vld [vmem:[#allocation2 + $0x78] sm:$0xff] }
  0x4e   :  { %2591 = vmatpush.bf16.msrb.mxu2 %v4544_v0  ;;  %v4578_v0 = vld [vmem:[#allocation8 + $0x298] sm:$0xff]  ;;  %v194_v52 = vsub.f32 %v90_v46, %v130_v43 }
  0x4f   :  { %2604 = vmatpush.bf16.msrb.mxu3 %v4552_v1  ;;  %v4586_v1 = vld [vmem:[#allocation8 + $0x2d8] sm:$0xff] }
  0x50   :  { %2566 = vmatpush.bf16.msrb.mxu0 %v4527_v4  ;;  %v5207_v4 = vpack.c.bf16 %v324_v60, %v323_v56  ;;  %v4654_v43 = vld [vmem:[#allocation8 + $0x4f8] sm:$0xff] }
  0x51   :  { %2579 = vmatpush.bf16.msrb.mxu1 %v4535_v5  ;;  %v5209_v5 = vpack.c.bf16 %v326_v63, %v325_v62 }
  0x52   :  { %2592 = vmatpush.bf16.msrb.mxu2 %v4543_v8  ;;  %v4560_v8 = vld [vmem:[#allocation8 + $0x208] sm:$0xff]  ;;  %v371_v10 = vunpack.c.l.bf16 %v5207_v4 }
  0x53   :  { %2605 = vmatpush.bf16.msrb.mxu3 %v4551_v9  ;;  %2567 = vmatmul.bf16.vlgmr.msrb.gmra.mxu0 %v431_v18  ;;  %v4568_v9 = vld [vmem:[#allocation8 + $0x248] sm:$0xff]  ;;  %v373_v11 = vunpack.c.l.bf16 %v5209_v5  ;;  %v4567_v18 = vld [vmem:[#allocation8 + $0x240] sm:$0xff] }
  0x54   :  { %2611 = vmatpush.bf16.msra.mxu0 %v4566_v12  ;;  %2580 = vmatmul.bf16.vlgmr.msrb.gmra.mxu1 %v432_v22  ;;  %v4576_v12 = vld [vmem:[#allocation8 + $0x288] sm:$0xff]  ;;  %v4583_v22 = vld [vmem:[#allocation8 + $0x2c0] sm:$0xff] }
  0x55   :  { %2624 = vmatpush.bf16.msra.mxu1 %v4574_v13  ;;  %2593 = vmatmul.bf16.vlgmr.msrb.gmra.mxu2 %v433_v17  ;;  %v4584_v13 = vld [vmem:[#allocation8 + $0x2c8] sm:$0xff]  ;;  %v4559_v17 = vld [vmem:[#allocation8 + $0x200] sm:$0xff] }
  0x56   :  { %2637 = vmatpush.bf16.msra.mxu2 %v4582_v15  ;;  %2606 = vmatmul.bf16.vlgmr.msrb.gmra.mxu3 %v434_v21  ;;  %v372_v15 = vunpack.c.h.bf16 %v5207_v4  ;;  %v4575_v21 = vld [vmem:[#allocation8 + $0x280] sm:$0xff] }
  0x57   :  { %2650 = vmatpush.bf16.msra.mxu3 %v4590_v16  ;;  %v374_v16 = vunpack.c.h.bf16 %v5209_v5 }
  0x58   :  { %2612 = vmatpush.bf16.msra.mxu0 %v4565_v19  ;;  %v403_v19 = vsub.f32 %v323_v56, %v371_v10  ;;  %v404_v23 = vsub.f32 %v324_v60, %v372_v15  ;;  %v4595_v60 = vld [vmem:[#allocation8 + $0x320] sm:$0xff]  ;;  %v4618_v15 = vld [vmem:[#allocation8 + $0x3d8] sm:$0xff] }
  0x59   :  { %2625 = vmatpush.bf16.msra.mxu1 %v4573_v20  ;;  %v405_v20 = vsub.f32 %v325_v62, %v373_v11  ;;  %v406_v26 = vsub.f32 %v326_v63, %v374_v16  ;;  %v4603_v62 = vld [vmem:[#allocation8 + $0x360] sm:$0xff]  ;;  %v4593_v16 = vld [vmem:[#allocation8 + $0x310] sm:$0xff] }
  0x5a   :  { %2638 = vmatpush.bf16.msra.mxu2 %v4581_v27  ;;  %v4598_v27 = vld [vmem:[#allocation8 + $0x338] sm:$0xff]  ;;  %v435_v31 = vpack.c.bf16 %v403_v19, %v403_v19  ;;  %v436_v32 = vpack.c.bf16 %v404_v23, %v404_v23  ;;  %v4609_v19 = vld [vmem:[#allocation8 + $0x390] sm:$0xff] }
  0x5b   :  { %2651 = vmatpush.bf16.msra.mxu3 %v4589_v24  ;;  %v437_v24 = vpack.c.bf16 %v405_v20, %v405_v20  ;;  %v438_v33 = vpack.c.bf16 %v406_v26, %v406_v26  ;;  %v4617_v20 = vld [vmem:[#allocation8 + $0x3d0] sm:$0xff] }
  0x5c   :  { %2613 = vmatpush.bf16.msra.mxu0 %v4564_v36  ;;  %v127_v36 = vperm.slane %v5195_v14, 4 }
  0x5d   :  { %2626 = vmatpush.bf16.msra.mxu1 %v4572_v37  ;;  %v128_v37 = vperm.slane %v5195_v14, 5 }
  0x5e   :  { %2639 = vmatpush.bf16.msra.mxu2 %v4580_v41  ;;  %v88_v41 = vld [vmem:[#allocation2 + $0x68] sm:$0xff] }
  0x5f   :  { %2652 = vmatpush.bf16.msra.mxu3 %v4588_v42  ;;  %v129_v42 = vperm.slane %v5195_v14, 6  ;;  %v4612_v14 = vld [vmem:[#allocation8 + $0x3a8] sm:$0xff] }
  0x60   :  { %2614 = vmatpush.bf16.msra.mxu0 %v4563_v47  ;;  %v191_v47 = vsub.f32 %v87_v40, %v127_v36  ;;  %v4638_v40 = vld [vmem:[#allocation8 + $0x478] sm:$0xff] }
  0x61   :  { %2627 = vmatpush.bf16.msra.mxu1 %v4571_v48  ;;  %v192_v48 = vsub.f32 %v88_v41, %v128_v37  ;;  %v193_v51 = vsub.f32 %v89_v45, %v129_v42  ;;  %v5231_v41 = vld [vmem:[#allocation5 + $0x10] sm:$0xff]  ;;  %v4646_v42 = vld [vmem:[#allocation8 + $0x4b8] sm:$0xff] }
  0x62   :  { %2640 = vmatpush.bf16.msra.mxu2 %v4579_v53  ;;  %v4620_v53 = vld [vmem:[#allocation8 + $0x3e8] sm:$0xff] }
  0x63   :  { %2653 = vmatpush.bf16.msra.mxu3 %v4587_v25  ;;  %v223_v25 = vmul.f32 %v191_v47, %v191_v47  ;;  %v224_v56 = vmul.f32 %v192_v48, %v192_v48  ;;  %v225_v63 = vmul.f32 %v193_v51, %v193_v51  ;;  %v4629_v48 = vld [vmem:[#allocation8 + $0x430] sm:$0xff]  ;;  %v132_v51 = vperm.slane %v5231_v41, 1 }
  0x64   :  { %2615 = vmatpush.bf16.msra.mxu0 %v4562_v57  ;;  %v263_v57 = vperm.slane %v5201_v38, 4 }
  0x65   :  { %2628 = vmatpush.bf16.msra.mxu1 %v4570_v59  ;;  %v264_v59 = vperm.slane %v5201_v38, 5 }
  0x66   :  { %2641 = vmatpush.bf16.msra.mxu2 %v4578_v0  ;;  %v226_v0 = vmul.f32 %v194_v52, %v194_v52  ;;  %v4645_v52 = vld [vmem:[#allocation8 + $0x4b0] sm:$0xff] }
  0x67   :  { %2654 = vmatpush.bf16.msra.mxu3 %v4586_v1  ;;  %v265_v1 = vperm.slane %v5201_v38, 6  ;;  %v328_v10 = vmul.f32 %v264_v59, %v224_v56  ;;  %v134_v56 = vperm.slane %v5231_v41, 3  ;;  %v93_v59 = vld [vmem:[#allocation2 + $0x90] sm:$0xff] }
  0x68   :  { %2616 = vmatpush.bf16.msra.mxu0 %v4561_v2  ;;  %v266_v2 = vperm.slane %v5201_v38, 7  ;;  %v4601_v38 = vld [vmem:[#allocation8 + $0x350] sm:$0xff] }
  0x69   :  { %2629 = vmatpush.bf16.msra.mxu1 %v4569_v3  ;;  %v4611_v3 = vld [vmem:[#allocation8 + $0x3a0] sm:$0xff]  ;;  %v329_v11 = vmul.f32 %v265_v1, %v225_v63  ;;  %v4636_v1 = vld [vmem:[#allocation8 + $0x468] sm:$0xff] }
  0x6a   :  { %2642 = vmatpush.bf16.msra.mxu2 %v4577_v6  ;;  %v4619_v6 = vld [vmem:[#allocation8 + $0x3e0] sm:$0xff] }
  0x6b   :  { %2655 = vmatpush.bf16.msra.mxu3 %v4585_v7  ;;  %v327_v7 = vmul.f32 %v263_v57, %v223_v25  ;;  %v133_v25 = vperm.slane %v5231_v41, 2  ;;  %v4653_v57 = vld [vmem:[#allocation8 + $0x4f0] sm:$0xff] }
  0x6c   :  { %2617 = vmatpush.bf16.msra.mxu0 %v4560_v8  ;;  %v4594_v8 = vld [vmem:[#allocation8 + $0x318] sm:$0xff] }
  0x6d   :  { %2630 = vmatpush.bf16.msra.mxu1 %v4568_v9  ;;  %v4602_v9 = vld [vmem:[#allocation8 + $0x358] sm:$0xff] }
  0x6e   :  { %2643 = vmatpush.bf16.msra.mxu2 %v4576_v12  ;;  %v330_v12 = vmul.f32 %v266_v2, %v226_v0  ;;  %v4628_v0 = vld [vmem:[#allocation8 + $0x428] sm:$0xff]  ;;  %v5237_v2 = vld [vmem:[#allocation7 + $0x10] sm:$0xff] }
  0x6f   :  { %2656 = vmatpush.bf16.msra.mxu3 %v4584_v13  ;;  %v4610_v13 = vld [vmem:[#allocation8 + $0x398] sm:$0xff] }
  0x70   :  { %2618 = vmatpush.bf16.msra.mxu0 %v4559_v17  ;;  %v5223_v17 = vpack.c.bf16 %v328_v10, %v327_v7 }
  0x71   :  { %2631 = vmatpush.bf16.msra.mxu1 %v4567_v18  ;;  %v5225_v18 = vpack.c.bf16 %v330_v12, %v329_v11 }
  0x72   :  { %2644 = vmatpush.bf16.msra.mxu2 %v4575_v21  ;;  %v4592_v21 = vld [vmem:[#allocation8 + $0x308] sm:$0xff]  ;;  %v375_v23 = vunpack.c.l.bf16 %v5223_v17 }
  0x73   :  { %2657 = vmatpush.bf16.msra.mxu3 %v4583_v22  ;;  %2619 = vmatmul.bf16.vlgmr.msra.gmra.mxu0 %v435_v31  ;;  %v4600_v22 = vld [vmem:[#allocation8 + $0x348] sm:$0xff]  ;;  %v377_v26 = vunpack.c.l.bf16 %v5225_v18  ;;  %v4591_v31 = vld [vmem:[#allocation8 + $0x300] sm:$0xff] }
  0x74   :  { %2663 = vmatpush.bf16.msrb.mxu0 %v4598_v27  ;;  %2632 = vmatmul.bf16.vlgmr.msra.gmra.mxu1 %v436_v32  ;;  %v4608_v27 = vld [vmem:[#allocation8 + $0x388] sm:$0xff]  ;;  %v407_v32 = vsub.f32 %v327_v7, %v375_v23 }
  0x75   :  { %2676 = vmatpush.bf16.msrb.mxu1 %v4606_v28  ;;  %2645 = vmatmul.bf16.vlgmr.msra.gmra.mxu2 %v437_v24  ;;  %v4616_v28 = vld [vmem:[#allocation8 + $0x3c8] sm:$0xff]  ;;  %v4599_v24 = vld [vmem:[#allocation8 + $0x340] sm:$0xff] }
  0x76   :  { %2689 = vmatpush.bf16.msrb.mxu2 %v4614_v29  ;;  %2658 = vmatmul.bf16.vlgmr.msra.gmra.mxu3 %v438_v33  ;;  %v376_v29 = vunpack.c.h.bf16 %v5223_v17  ;;  %v409_v33 = vsub.f32 %v329_v11, %v377_v26  ;;  %v4644_v7 = vld [vmem:[#allocation8 + $0x4a8] sm:$0xff]  ;;  %v267_v11 = vperm.slane %v5237_v2, 0  ;;  %v4626_v26 = vld [vmem:[#allocation8 + $0x418] sm:$0xff] }
  0x77   :  { %2702 = vmatpush.bf16.msrb.mxu3 %v4622_v30  ;;  %v378_v30 = vunpack.c.h.bf16 %v5225_v18 }
  0x78   :  { %2664 = vmatpush.bf16.msrb.mxu0 %v4597_v34  ;;  %v4607_v34 = vld [vmem:[#allocation8 + $0x380] sm:$0xff]  ;;  %v408_v36 = vsub.f32 %v328_v10, %v376_v29  ;;  %v441_v45 = vpack.c.bf16 %v409_v33, %v409_v33  ;;  %v4633_v33 = vld [vmem:[#allocation8 + $0x450] sm:$0xff] }
  0x79   :  { %2677 = vmatpush.bf16.msrb.mxu1 %v4605_v35  ;;  %v4615_v35 = vld [vmem:[#allocation8 + $0x3c0] sm:$0xff]  ;;  %v410_v37 = vsub.f32 %v330_v12, %v378_v30  ;;  %v268_v12 = vperm.slane %v5237_v2, 1 }
  0x7a   :  { %2690 = vmatpush.bf16.msrb.mxu2 %v4613_v39  ;;  %v4630_v39 = vld [vmem:[#allocation8 + $0x438] sm:$0xff]  ;;  %v440_v46 = vpack.c.bf16 %v408_v36, %v408_v36  ;;  %v4641_v36 = vld [vmem:[#allocation8 + $0x490] sm:$0xff] }
  0x7b   :  { %2703 = vmatpush.bf16.msrb.mxu3 %v4621_v44  ;;  %v439_v44 = vpack.c.bf16 %v407_v32, %v407_v32  ;;  %v442_v47 = vpack.c.bf16 %v410_v37, %v410_v37  ;;  %v4625_v32 = vld [vmem:[#allocation8 + $0x410] sm:$0xff] }
  0x7c   :  { %2665 = vmatpush.bf16.msrb.mxu0 %v4596_v49  ;;  %v4637_v49 = vld [vmem:[#allocation8 + $0x470] sm:$0xff] }
  0x7d   :  { %2678 = vmatpush.bf16.msrb.mxu1 %v4604_v50  ;;  %v131_v50 = vperm.slane %v5231_v41, 0  ;;  %v4649_v37 = vld [vmem:[#allocation8 + $0x4d0] sm:$0xff] }
  0x7e   :  { %2691 = vmatpush.bf16.msrb.mxu2 %v4612_v14  ;;  %v91_v14 = vld [vmem:[#allocation2 + $0x80] sm:$0xff] }
  0x7f   :  { %2704 = vmatpush.bf16.msrb.mxu3 %v4620_v53  ;;  %v92_v53 = vld [vmem:[#allocation2 + $0x88] sm:$0xff] }
  0x80   :  { %2666 = vmatpush.bf16.msrb.mxu0 %v4595_v60  ;;  %v94_v60 = vld [vmem:[#allocation2 + $0x98] sm:$0xff]  ;;  %v196_v63 = vsub.f32 %v92_v53, %v132_v51 }
  0x81   :  { %2679 = vmatpush.bf16.msrb.mxu1 %v4603_v62  ;;  %v195_v62 = vsub.f32 %v91_v14, %v131_v50  ;;  %v4647_v14 = vld [vmem:[#allocation8 + $0x4c0] sm:$0xff] }
  0x82   :  { %2692 = vmatpush.bf16.msrb.mxu2 %v4611_v3  ;;  %v197_v3 = vsub.f32 %v93_v59, %v133_v25  ;;  %v228_v10 = vmul.f32 %v196_v63, %v196_v63  ;;  %v4678_v59 = vld [vmem:[#allocation8 + $0x5b8] sm:$0xff] }
  0x83   :  { %2705 = vmatpush.bf16.msrb.mxu3 %v4619_v6  ;;  %v198_v6 = vsub.f32 %v94_v60, %v134_v56  ;;  %v4662_v56 = vld [vmem:[#allocation8 + $0x538] sm:$0xff] }
  0x84   :  { %2667 = vmatpush.bf16.msrb.mxu0 %v4594_v8  ;;  %v4652_v8 = vld [vmem:[#allocation8 + $0x4e8] sm:$0xff]  ;;  %v4686_v60 = vld [vmem:[#allocation8 + $0x5f8] sm:$0xff] }
  0x85   :  { %2680 = vmatpush.bf16.msrb.mxu1 %v4602_v9  ;;  %v227_v9 = vmul.f32 %v195_v62, %v195_v62 }
  0x86   :  { %2693 = vmatpush.bf16.msrb.mxu2 %v4610_v13  ;;  %v4627_v13 = vld [vmem:[#allocation8 + $0x420] sm:$0xff] }
  0x87   :  { %2706 = vmatpush.bf16.msrb.mxu3 %v4618_v15  ;;  %v4635_v15 = vld [vmem:[#allocation8 + $0x460] sm:$0xff]  ;;  %v331_v23 = vmul.f32 %v267_v11, %v227_v9  ;;  %v4677_v9 = vld [vmem:[#allocation8 + $0x5b0] sm:$0xff]  ;;  %v96_v11 = vld [vmem:[#allocation2 + $0xa8] sm:$0xff] }
  0x88   :  { %2668 = vmatpush.bf16.msrb.mxu0 %v4593_v16  ;;  %v229_v16 = vmul.f32 %v197_v3, %v197_v3  ;;  %v4661_v3 = vld [vmem:[#allocation8 + $0x530] sm:$0xff] }
  0x89   :  { %2681 = vmatpush.bf16.msrb.mxu1 %v4601_v38  ;;  %v230_v38 = vmul.f32 %v198_v6, %v198_v6  ;;  %v4669_v6 = vld [vmem:[#allocation8 + $0x570] sm:$0xff] }
  0x8a   :  { %2694 = vmatpush.bf16.msrb.mxu2 %v4609_v19  ;;  %v269_v19 = vperm.slane %v5237_v2, 2 }
  0x8b   :  { %2707 = vmatpush.bf16.msrb.mxu3 %v4617_v20  ;;  %v270_v20 = vperm.slane %v5237_v2, 3 }
  0x8c   :  { %2669 = vmatpush.bf16.msrb.mxu0 %v4592_v21  ;;  %v4643_v21 = vld [vmem:[#allocation8 + $0x4a0] sm:$0xff]  ;;  %v333_v29 = vmul.f32 %v269_v19, %v229_v16  ;;  %v97_v16 = vld [vmem:[#allocation2 + $0xb0] sm:$0xff] }
  0x8d   :  { %2682 = vmatpush.bf16.msrb.mxu1 %v4600_v22  ;;  %v4651_v22 = vld [vmem:[#allocation8 + $0x4e0] sm:$0xff]  ;;  %v334_v30 = vmul.f32 %v270_v20, %v230_v38  ;;  %v98_v38 = vld [vmem:[#allocation2 + $0xb8] sm:$0xff] }
  0x8e   :  { %2695 = vmatpush.bf16.msrb.mxu2 %v4608_v27  ;;  %v4634_v27 = vld [vmem:[#allocation8 + $0x458] sm:$0xff] }
  0x8f   :  { %2708 = vmatpush.bf16.msrb.mxu3 %v4616_v28  ;;  %v332_v28 = vmul.f32 %v268_v12, %v228_v10  ;;  %v95_v10 = vld [vmem:[#allocation2 + $0xa0] sm:$0xff]  ;;  %v137_v12 = vperm.slane %v5231_v41, 6 }
  0x90   :  { %2670 = vmatpush.bf16.msrb.mxu0 %v4591_v31  ;;  %v4642_v31 = vld [vmem:[#allocation8 + $0x498] sm:$0xff] }
  0x91   :  { %2683 = vmatpush.bf16.msrb.mxu1 %v4599_v24  ;;  %v4650_v24 = vld [vmem:[#allocation8 + $0x4d8] sm:$0xff] }
  0x92   :  { %2696 = vmatpush.bf16.msrb.mxu2 %v4607_v34  ;;  %v5243_v34 = vpack.c.bf16 %v332_v28, %v331_v23 }
  0x93   :  { %2709 = vmatpush.bf16.msrb.mxu3 %v4615_v35  ;;  %2671 = vmatmul.bf16.vlgmr.msrb.gmra.mxu0 %v439_v44  ;;  %v5245_v35 = vpack.c.bf16 %v334_v30, %v333_v29  ;;  %v4640_v44 = vld [vmem:[#allocation8 + $0x488] sm:$0xff] }
  0x94   :  { %2715 = vmatpush.bf16.msra.mxu0 %v4630_v39  ;;  %2684 = vmatmul.bf16.vlgmr.msrb.gmra.mxu1 %v440_v46  ;;  %v4624_v39 = vld [vmem:[#allocation8 + $0x408] sm:$0xff]  ;;  %v380_v46 = vunpack.c.h.bf16 %v5243_v34 }
  0x95   :  { %2728 = vmatpush.bf16.msra.mxu1 %v4638_v40  ;;  %2697 = vmatmul.bf16.vlgmr.msrb.gmra.mxu2 %v441_v45  ;;  %v4632_v40 = vld [vmem:[#allocation8 + $0x448] sm:$0xff] }
  0x96   :  { %2741 = vmatpush.bf16.msra.mxu2 %v4646_v42  ;;  %2710 = vmatmul.bf16.vlgmr.msrb.gmra.mxu3 %v442_v47  ;;  %v379_v42 = vunpack.c.l.bf16 %v5243_v34  ;;  %v4648_v45 = vld [vmem:[#allocation8 + $0x4c8] sm:$0xff]  ;;  %v382_v47 = vunpack.c.h.bf16 %v5245_v35  ;;  %v412_v53 = vsub.f32 %v332_v28, %v380_v46 }
  0x97   :  { %2754 = vmatpush.bf16.msra.mxu3 %v4654_v43  ;;  %v381_v43 = vunpack.c.l.bf16 %v5245_v35 }
  0x98   :  { %2716 = vmatpush.bf16.msra.mxu0 %v4629_v48  ;;  %v4623_v48 = vld [vmem:[#allocation8 + $0x400] sm:$0xff]  ;;  %v411_v50 = vsub.f32 %v331_v23, %v379_v42  ;;  %v414_v25 = vsub.f32 %v334_v30, %v382_v47  ;;  %v201_v23 = vsub.f32 %v97_v16, %v137_v12  ;;  %v271_v30 = vperm.slane %v5237_v2, 4  ;;  %v4658_v47 = vld [vmem:[#allocation8 + $0x518] sm:$0xff] }
  0x99   :  { %2729 = vmatpush.bf16.msra.mxu1 %v4637_v49  ;;  %v4631_v49 = vld [vmem:[#allocation8 + $0x440] sm:$0xff]  ;;  %v413_v51 = vsub.f32 %v333_v29, %v381_v43 }
  0x9a   :  { %2742 = vmatpush.bf16.msra.mxu2 %v4645_v52  ;;  %v4639_v52 = vld [vmem:[#allocation8 + $0x480] sm:$0xff]  ;;  %v443_v62 = vpack.c.bf16 %v411_v50, %v411_v50 }
  0x9b   :  { %2755 = vmatpush.bf16.msra.mxu3 %v4653_v57  ;;  %v4670_v57 = vld [vmem:[#allocation8 + $0x578] sm:$0xff]  ;;  %v445_v63 = vpack.c.bf16 %v413_v51, %v413_v51  ;;  %v4683_v42 = vld [vmem:[#allocation8 + $0x5e0] sm:$0xff] }
  0x9c   :  { %2717 = vmatpush.bf16.msra.mxu0 %v4628_v0  ;;  %v444_v0 = vpack.c.bf16 %v412_v53, %v412_v53 }
  0x9d   :  { %2730 = vmatpush.bf16.msra.mxu1 %v4636_v1  ;;  %v446_v1 = vpack.c.bf16 %v414_v25, %v414_v25 }
  0x9e   :  { %2743 = vmatpush.bf16.msra.mxu2 %v4644_v7  ;;  %v135_v7 = vperm.slane %v5231_v41, 4 }
  0x9f   :  { %2756 = vmatpush.bf16.msra.mxu3 %v4652_v8  ;;  %v136_v8 = vperm.slane %v5231_v41, 5 }
  0xa0   :  { %2718 = vmatpush.bf16.msra.mxu0 %v4627_v13  ;;  %v138_v13 = vperm.slane %v5231_v41, 7  ;;  %v199_v19 = vsub.f32 %v95_v10, %v135_v7  ;;  %v4676_v41 = vld [vmem:[#allocation8 + $0x5a8] sm:$0xff] }
  0xa1   :  { %2731 = vmatpush.bf16.msra.mxu1 %v4635_v15  ;;  %v4685_v15 = vld [vmem:[#allocation8 + $0x5f0] sm:$0xff]  ;;  %v200_v20 = vsub.f32 %v96_v11, %v136_v8  ;;  %v4664_v7 = vld [vmem:[#allocation8 + $0x548] sm:$0xff] }
  0xa2   :  { %2744 = vmatpush.bf16.msra.mxu2 %v4643_v21  ;;  %v4660_v21 = vld [vmem:[#allocation8 + $0x528] sm:$0xff]  ;;  %v231_v28 = vmul.f32 %v199_v19, %v199_v19  ;;  %v4663_v19 = vld [vmem:[#allocation8 + $0x540] sm:$0xff] }
  0xa3   :  { %2757 = vmatpush.bf16.msra.mxu3 %v4651_v22  ;;  %v4668_v22 = vld [vmem:[#allocation8 + $0x568] sm:$0xff]  ;;  %v232_v29 = vmul.f32 %v200_v20, %v200_v20 }
  0xa4   :  { %2719 = vmatpush.bf16.msra.mxu0 %v4626_v26  ;;  %v202_v26 = vsub.f32 %v98_v38, %v138_v13  ;;  %v4672_v10 = vld [vmem:[#allocation8 + $0x588] sm:$0xff]  ;;  %v4655_v38 = vld [vmem:[#allocation8 + $0x500] sm:$0xff] }
  0xa5   :  { %2732 = vmatpush.bf16.msra.mxu1 %v4634_v27  ;;  %v4684_v27 = vld [vmem:[#allocation8 + $0x5e8] sm:$0xff] }
  0xa6   :  { %2745 = vmatpush.bf16.msra.mxu2 %v4642_v31  ;;  %v272_v31 = vperm.slane %v5237_v2, 5  ;;  %v4680_v11 = vld [vmem:[#allocation8 + $0x5c8] sm:$0xff] }
  0xa7   :  { %2758 = vmatpush.bf16.msra.mxu3 %v4650_v24  ;;  %v4659_v24 = vld [vmem:[#allocation8 + $0x520] sm:$0xff] }
  0xa8   :  { %2720 = vmatpush.bf16.msra.mxu0 %v4625_v32  ;;  %v4667_v32 = vld [vmem:[#allocation8 + $0x560] sm:$0xff] }
  0xa9   :  { %2733 = vmatpush.bf16.msra.mxu1 %v4633_v33  ;;  %v233_v33 = vmul.f32 %v201_v23, %v201_v23  ;;  %v4679_v23 = vld [vmem:[#allocation8 + $0x5c0] sm:$0xff] }
  0xaa   :  { %2746 = vmatpush.bf16.msra.mxu2 %v4641_v36  ;;  %v234_v36 = vmul.f32 %v202_v26, %v202_v26 }
  0xab   :  { %2759 = vmatpush.bf16.msra.mxu3 %v4649_v37  ;;  %v273_v37 = vperm.slane %v5237_v2, 6 }
  0xac   :  { %2721 = vmatpush.bf16.msra.mxu0 %v4624_v39  ;;  %v274_v39 = vperm.slane %v5237_v2, 7 }
  0xad   :  { %2734 = vmatpush.bf16.msra.mxu1 %v4632_v40  ;;  %v4675_v40 = vld [vmem:[#allocation8 + $0x5a0] sm:$0xff] }
  0xae   :  { %2747 = vmatpush.bf16.msra.mxu2 %v4640_v44  ;;  %v335_v44 = vmul.f32 %v271_v30, %v231_v28  ;;  %v338_v50 = vmul.f32 %v274_v39, %v234_v36  ;;  %v4694_v28 = vld [vmem:[#allocation8 + $0x638] sm:$0xff]  ;;  %v4693_v39 = vld [vmem:[#allocation8 + $0x630] sm:$0xff] }
  0xaf   :  { %2760 = vmatpush.bf16.msra.mxu3 %v4648_v45  ;;  %v336_v45 = vmul.f32 %v272_v31, %v232_v29  ;;  %v4702_v29 = vld [vmem:[#allocation8 + $0x678] sm:$0xff] }
  0xb0   :  { %2722 = vmatpush.bf16.msra.mxu0 %v4623_v48  ;;  %v2516_v43 = vpop.f32.mrf.mxu0  ;;  %v4666_v48 = vld [vmem:[#allocation8 + $0x558] sm:$0xff] }
  0xb1   :  { %2735 = vmatpush.bf16.msra.mxu1 %v4631_v49  ;;  %v2529_v46 = vpop.f32.mrf.mxu1  ;;  %v337_v49 = vmul.f32 %v273_v37, %v233_v33  ;;  %v4710_v30 = vld [vmem:[#allocation8 + $0x6b8] sm:$0xff] }
  0xb2   :  { %2748 = vmatpush.bf16.msra.mxu2 %v4639_v52  ;;  %v2530_v51 = vadd.f32 %v2529_v46, %v2516_v43  ;;  %v4674_v52 = vld [vmem:[#allocation8 + $0x598] sm:$0xff]  ;;  %v101_v46 = vld [vmem:[#allocation2 + $0xd0] sm:$0xff] }
  0xb3   :  { %2761 = vmatpush.bf16.msra.mxu3 %v4647_v14  ;;  %2723 = vmatmul.bf16.vlgmr.msra.gmra.mxu0 %v443_v62  ;;  %v4682_v14 = vld [vmem:[#allocation8 + $0x5d8] sm:$0xff]  ;;  %v4673_v62 = vld [vmem:[#allocation8 + $0x590] sm:$0xff] }
  0xb4   :  { %2767 = vmatpush.bf16.msrb.mxu0 %v4662_v56  ;;  %2736 = vmatmul.bf16.vlgmr.msra.gmra.mxu1 %v444_v0  ;;  %v4657_v56 = vld [vmem:[#allocation8 + $0x510] sm:$0xff]  ;;  %v4718_v31 = vld [vmem:[#allocation8 + $0x6f8] sm:$0xff] }
  0xb5   :  { %2780 = vmatpush.bf16.msrb.mxu1 %v4670_v57  ;;  %2749 = vmatmul.bf16.vlgmr.msra.gmra.mxu2 %v445_v63  ;;  %v4665_v57 = vld [vmem:[#allocation8 + $0x550] sm:$0xff] }
  0xb6   :  { %2793 = vmatpush.bf16.msrb.mxu2 %v4678_v59  ;;  %2762 = vmatmul.bf16.vlgmr.msra.gmra.mxu3 %v446_v1  ;;  %v5259_v59 = vpack.c.bf16 %v336_v45, %v335_v44  ;;  %v4681_v63 = vld [vmem:[#allocation8 + $0x5d0] sm:$0xff] }
  0xb7   :  { %2806 = vmatpush.bf16.msrb.mxu3 %v4686_v60  ;;  %v5261_v60 = vpack.c.bf16 %v338_v50, %v337_v49 }
  0xb8   :  { %2768 = vmatpush.bf16.msrb.mxu0 %v4661_v3  ;;  %v2542_v2 = vpop.f32.mrf.mxu2  ;;  %v2518_v1 = vpop.f32.mrf.mxu0  ;;  %v383_v8 = vunpack.c.l.bf16 %v5259_v59  ;;  %v384_v12 = vunpack.c.h.bf16 %v5259_v59 }
  0xb9   :  { %2781 = vmatpush.bf16.msrb.mxu1 %v4669_v6  ;;  %v2555_v53 = vpop.f32.mrf.mxu3  ;;  %v2543_v25 = vadd.f32 %v2542_v2, %v2530_v51  ;;  %v2531_v3 = vpop.f32.mrf.mxu1  ;;  %v4656_v6 = vld [vmem:[#allocation8 + $0x508] sm:$0xff]  ;;  %v386_v13 = vunpack.c.h.bf16 %v5261_v60 }
  0xba   :  { %2794 = vmatpush.bf16.msrb.mxu2 %v4677_v9  ;;  %v385_v9 = vunpack.c.l.bf16 %v5261_v60  ;;  %v415_v20 = vsub.f32 %v335_v44, %v383_v8  ;;  %v416_v26 = vsub.f32 %v336_v45, %v384_v12  ;;  %v4701_v44 = vld [vmem:[#allocation8 + $0x670] sm:$0xff]  ;;  %v100_v45 = vld [vmem:[#allocation2 + $0xc8] sm:$0xff] }
  0xbb   :  { %2807 = vmatpush.bf16.msrb.mxu3 %v4685_v15  ;;  %v5263_v0 = vadd.f32 %v2555_v53, %v2543_v25  ;;  %v4692_v2 = vld [vmem:[#allocation8 + $0x628] sm:$0xff]  ;;  %v5275_v25 = vld [vmem:[#allocation7 + $0x18] sm:$0xff] }
  0xbc   :  { %2769 = vmatpush.bf16.msrb.mxu0 %v4660_v21  ;;  %v417_v21 = vsub.f32 %v337_v49, %v385_v9  ;;  %v448_v36 = vpack.c.bf16 %v416_v26, %v416_v26  ;;  %v4717_v49 = vld [vmem:[#allocation8 + $0x6f0] sm:$0xff]  ;;  %v4700_v53 = vld [vmem:[#allocation8 + $0x668] sm:$0xff]  ;;  %v4691_v9 = vld [vmem:[#allocation8 + $0x620] sm:$0xff] }
  0xbd   :  { %2782 = vmatpush.bf16.msrb.mxu1 %v4668_v22  ;;  %v4671_v22 = vld [vmem:[#allocation8 + $0x580] sm:$0xff] }
  0xbe   :  { %2795 = vmatpush.bf16.msrb.mxu2 %v4676_v41  ;;  %v418_v41 = vsub.f32 %v338_v50, %v386_v13  ;;  %v102_v50 = vld [vmem:[#allocation2 + $0xd8] sm:$0xff] }
  0xbf   :  { %2808 = vmatpush.bf16.msrb.mxu3 %v4684_v27  ;;  %v5269_v27 = vld [vmem:[#allocation5 + $0x18] sm:$0xff] }
  0xc0   :  { %2770 = vmatpush.bf16.msrb.mxu0 %v4659_v24  ;;  %v2544_v15 = vpop.f32.mrf.mxu2  ;;  %v447_v24 = vpack.c.bf16 %v415_v20, %v415_v20  ;;  %v139_v33 = vperm.slane %v5269_v27, 0  ;;  %v450_v37 = vpack.c.bf16 %v418_v41, %v418_v41  ;;  %v141_v43 = vperm.slane %v5269_v27, 2 }
  0xc1   :  { %2783 = vmatpush.bf16.msrb.mxu1 %v4667_v32  ;;  %v2557_v16 = vpop.f32.mrf.mxu3  ;;  %v449_v32 = vpack.c.bf16 %v417_v21, %v417_v21  ;;  %v277_v15 = vperm.slane %v5275_v25, 2 }
  0xc2   :  { %2796 = vmatpush.bf16.msrb.mxu2 %v4675_v40  ;;  %v99_v40 = vld [vmem:[#allocation2 + $0xc0] sm:$0xff]  ;;  %v278_v16 = vperm.slane %v5275_v25, 3 }
  0xc3   :  { %2809 = vmatpush.bf16.msrb.mxu3 %v4683_v42  ;;  %v140_v42 = vperm.slane %v5269_v27, 1  ;;  %v203_v51 = vsub.f32 %v99_v40, %v139_v33  ;;  %v4689_v33 = vld [vmem:[#allocation8 + $0x610] sm:$0xff] }
  0xc4   :  { %2771 = vmatpush.bf16.msrb.mxu0 %v4658_v47  ;;  %v142_v47 = vperm.slane %v5269_v27, 3 }
  0xc5   :  { %2784 = vmatpush.bf16.msrb.mxu1 %v4666_v48  ;;  %v4709_v48 = vld [vmem:[#allocation8 + $0x6b0] sm:$0xff] }
  0xc6   :  { %2797 = vmatpush.bf16.msrb.mxu2 %v4674_v52  ;;  %v204_v52 = vsub.f32 %v100_v45, %v140_v42  ;;  %v4688_v45 = vld [vmem:[#allocation8 + $0x608] sm:$0xff] }
  0xc7   :  { %2810 = vmatpush.bf16.msrb.mxu3 %v4682_v14  ;;  %v205_v14 = vsub.f32 %v101_v46, %v141_v43  ;;  %v4705_v43 = vld [vmem:[#allocation8 + $0x690] sm:$0xff]  ;;  %v4696_v46 = vld [vmem:[#allocation8 + $0x648] sm:$0xff] }
  0xc8   :  { %2772 = vmatpush.bf16.msrb.mxu0 %v4657_v56  ;;  %v206_v56 = vsub.f32 %v102_v50, %v142_v47  ;;  %v236_v3 = vmul.f32 %v204_v52, %v204_v52  ;;  %v4712_v50 = vld [vmem:[#allocation8 + $0x6c8] sm:$0xff] }
  0xc9   :  { %2785 = vmatpush.bf16.msrb.mxu1 %v4665_v57  ;;  %v4708_v57 = vld [vmem:[#allocation8 + $0x6a8] sm:$0xff]  ;;  %v237_v8 = vmul.f32 %v205_v14, %v205_v14 }
  0xca   :  { %2798 = vmatpush.bf16.msrb.mxu2 %v4673_v62  ;;  %v4716_v62 = vld [vmem:[#allocation8 + $0x6e8] sm:$0xff]  ;;  %v238_v13 = vmul.f32 %v206_v56, %v206_v56  ;;  %v4695_v56 = vld [vmem:[#allocation8 + $0x640] sm:$0xff] }
  0xcb   :  { %2811 = vmatpush.bf16.msrb.mxu3 %v4681_v63  ;;  %v235_v63 = vmul.f32 %v203_v51, %v203_v51  ;;  %v341_v41 = vmul.f32 %v277_v15, %v237_v8  ;;  %v4734_v8 = vld [vmem:[#allocation8 + $0x778] sm:$0xff] }
  0xcc   :  { %2773 = vmatpush.bf16.msrb.mxu0 %v4656_v6  ;;  %v275_v6 = vperm.slane %v5275_v25, 0 }
  0xcd   :  { %2786 = vmatpush.bf16.msrb.mxu1 %v4664_v7  ;;  %v276_v7 = vperm.slane %v5275_v25, 1 }
  0xce   :  { %2799 = vmatpush.bf16.msrb.mxu2 %v4672_v10  ;;  %v4699_v10 = vld [vmem:[#allocation8 + $0x660] sm:$0xff]  ;;  %v339_v21 = vmul.f32 %v275_v6, %v235_v63 }
  0xcf   :  { %2812 = vmatpush.bf16.msrb.mxu3 %v4680_v11  ;;  %v340_v26 = vmul.f32 %v276_v7, %v236_v3  ;;  %v4703_v63 = vld [vmem:[#allocation8 + $0x680] sm:$0xff]  ;;  %v4726_v7 = vld [vmem:[#allocation8 + $0x738] sm:$0xff] }
  0xd0   :  { %2774 = vmatpush.bf16.msrb.mxu0 %v4655_v38  ;;  %v2568_v1 = vpop.f32.mrf.mxu0  ;;  %v4707_v38 = vld [vmem:[#allocation8 + $0x6a0] sm:$0xff] }
  0xd1   :  { %2787 = vmatpush.bf16.msrb.mxu1 %v4663_v19  ;;  %v2569_v11 = vadd.f32 %v2568_v1, %v5263_v0  ;;  %v2581_v12 = vpop.f32.mrf.mxu1  ;;  %v4715_v19 = vld [vmem:[#allocation8 + $0x6e0] sm:$0xff]  ;;  %v4706_v0 = vld [vmem:[#allocation8 + $0x698] sm:$0xff] }
  0xd2   :  { %2800 = vmatpush.bf16.msrb.mxu2 %v4671_v22  ;;  %v4690_v22 = vld [vmem:[#allocation8 + $0x618] sm:$0xff]  ;;  %v4711_v1 = vld [vmem:[#allocation8 + $0x6c0] sm:$0xff] }
  0xd3   :  { %2813 = vmatpush.bf16.msrb.mxu3 %v4679_v23  ;;  %2775 = vmatmul.bf16.vlgmr.msrb.gmra.mxu0 %v447_v24  ;;  %v2582_v20 = vadd.f32 %v2581_v12, %v2569_v11  ;;  %v4698_v23 = vld [vmem:[#allocation8 + $0x658] sm:$0xff] }
  0xd4   :  { %2819 = vmatpush.bf16.msra.mxu0 %v4694_v28  ;;  %2788 = vmatmul.bf16.vlgmr.msrb.gmra.mxu1 %v448_v36  ;;  %v342_v28 = vmul.f32 %v278_v16, %v238_v13  ;;  %v4697_v36 = vld [vmem:[#allocation8 + $0x650] sm:$0xff]  ;;  %v143_v13 = vperm.slane %v5269_v27, 4 }
  0xd5   :  { %2832 = vmatpush.bf16.msra.mxu1 %v4702_v29  ;;  %2801 = vmatmul.bf16.vlgmr.msrb.gmra.mxu2 %v449_v32  ;;  %v4714_v29 = vld [vmem:[#allocation8 + $0x6d8] sm:$0xff] }
  0xd6   :  { %2845 = vmatpush.bf16.msra.mxu2 %v4710_v30  ;;  %2814 = vmatmul.bf16.vlgmr.msrb.gmra.mxu3 %v450_v37  ;;  %v5286_v40 = vpack.c.bf16 %v342_v28, %v341_v41 }
  0xd7   :  { %2858 = vmatpush.bf16.msra.mxu3 %v4718_v31 }
  0xd8   :  { %2820 = vmatpush.bf16.msra.mxu0 %v4693_v39  ;;  %v2594_v30 = vpop.f32.mrf.mxu2  ;;  %v2570_v32 = vpop.f32.mrf.mxu0  ;;  %v5284_v39 = vpack.c.bf16 %v340_v26, %v339_v21  ;;  %v390_v52 = vunpack.c.h.bf16 %v5286_v40 }
  0xd9   :  { %2833 = vmatpush.bf16.msra.mxu1 %v4701_v44  ;;  %v2595_v31 = vadd.f32 %v2594_v30, %v2582_v20  ;;  %v2607_v24 = vpop.f32.mrf.mxu3  ;;  %v2583_v42 = vpop.f32.mrf.mxu1  ;;  %v4713_v44 = vld [vmem:[#allocation8 + $0x6d0] sm:$0xff]  ;;  %v144_v20 = vperm.slane %v5269_v27, 5  ;;  %v5303_v32 = vld [vmem:[#allocation8 + $0x728] sm:$0xff] }
  0xda   :  { %2846 = vmatpush.bf16.msra.mxu2 %v4709_v48  ;;  %v387_v47 = vunpack.c.l.bf16 %v5284_v39  ;;  %v389_v48 = vunpack.c.l.bf16 %v5286_v40  ;;  %v388_v51 = vunpack.c.h.bf16 %v5284_v39  ;;  %v422_v6 = vsub.f32 %v342_v28, %v390_v52  ;;  %v5298_v28 = vld [vmem:[#allocation8 + $0x7b0] sm:$0xff]  ;;  %v5311_v42 = vld [vmem:[#allocation8 + $0x7e8] sm:$0xff] }
  0xdb   :  { %2859 = vmatpush.bf16.msra.mxu3 %v4717_v49  ;;  %v5282_v37 = vadd.f32 %v2607_v24, %v2595_v31  ;;  %v4704_v49 = vld [vmem:[#allocation8 + $0x688] sm:$0xff] }
  0xdc   :  { %2821 = vmatpush.bf16.msra.mxu0 %v4692_v2  ;;  %v420_v3 = vsub.f32 %v340_v26, %v388_v51  ;;  %v454_v16 = vpack.c.bf16 %v422_v6, %v422_v6  ;;  %v105_v26 = vld [vmem:[#allocation2 + $0xf0] sm:$0xff]  ;;  %v5320_v51 = vld [vmem:[#allocation8 + $0x760] sm:$0xff] }
  0xdd   :  { %2834 = vmatpush.bf16.msra.mxu1 %v4700_v53  ;;  %v4687_v53 = vld [vmem:[#allocation8 + $0x600] sm:$0xff] }
  0xde   :  { %2847 = vmatpush.bf16.msra.mxu2 %v4708_v57  ;;  %v419_v57 = vsub.f32 %v339_v21, %v387_v47  ;;  %v452_v15 = vpack.c.bf16 %v420_v3, %v420_v3  ;;  %v145_v21 = vperm.slane %v5269_v27, 6  ;;  %v280_v47 = vperm.slane %v5275_v25, 5 }
  0xdf   :  { %2860 = vmatpush.bf16.msra.mxu3 %v4716_v62  ;;  %v421_v62 = vsub.f32 %v341_v41, %v389_v48  ;;  %v146_v41 = vperm.slane %v5269_v27, 7  ;;  %v5305_v27 = vld [vmem:[#allocation8 + $0x768] sm:$0xff] }
  0xe0   :  { %2822 = vmatpush.bf16.msra.mxu0 %v4691_v9  ;;  %v2596_v14 = vpop.f32.mrf.mxu2  ;;  %v4742_v9 = vld [vmem:[#allocation8 + $0x7b8] sm:$0xff]  ;;  %v451_v11 = vpack.c.bf16 %v419_v57, %v419_v57  ;;  %v209_v24 = vsub.f32 %v105_v26, %v145_v21  ;;  %v5328_v57 = vld [vmem:[#allocation8 + $0x7e0] sm:$0xff]  ;;  %v5356_v21 = vld [vmem:[#allocation8 + $0x790] sm:$0xff] }
  0xe1   :  { %2835 = vmatpush.bf16.msra.mxu1 %v4699_v10  ;;  %v2609_v2 = vpop.f32.mrf.mxu3  ;;  %v4750_v10 = vld [vmem:[#allocation8 + $0x7f8] sm:$0xff]  ;;  %v453_v12 = vpack.c.bf16 %v421_v62, %v421_v62  ;;  %v5362_v26 = vld [vmem:[#allocation8 + $0x708] sm:$0xff] }
  0xe2   :  { %2848 = vmatpush.bf16.msra.mxu2 %v4707_v38  ;;  %v4725_v38 = vld [vmem:[#allocation8 + $0x730] sm:$0xff]  ;;  %v241_v48 = vmul.f32 %v209_v24, %v209_v24  ;;  %v281_v2 = vperm.slane %v5275_v25, 6  ;;  %v5372_v24 = vld [vmem:[#allocation8 + $0x7c8] sm:$0xff] }
  0xe3   :  { %2861 = vmatpush.bf16.msra.mxu3 %v4715_v19  ;;  %v103_v19 = vld [vmem:[#allocation2 + $0xe0] sm:$0xff] }
  0xe4   :  { %2823 = vmatpush.bf16.msra.mxu0 %v4690_v22  ;;  %v5295_v22 = vld [vmem:[#allocation8 + $0x770] sm:$0xff]  ;;  %v207_v30 = vsub.f32 %v103_v19, %v143_v13 }
  0xe5   :  { %2836 = vmatpush.bf16.msra.mxu1 %v4698_v23  ;;  %v104_v23 = vld [vmem:[#allocation2 + $0xe8] sm:$0xff] }
  0xe6   :  { %2849 = vmatpush.bf16.msra.mxu2 %v4706_v0  ;;  %v5300_v0 = vld [vmem:[#allocation8 + $0x7f0] sm:$0xff]  ;;  %v208_v31 = vsub.f32 %v104_v23, %v144_v20 }
  0xe7   :  { %2862 = vmatpush.bf16.msra.mxu3 %v4714_v29  ;;  %v106_v29 = vld [vmem:[#allocation2 + $0xf8] sm:$0xff]  ;;  %v5358_v23 = vld [vmem:[#allocation8 + $0x7d0] sm:$0xff] }
  0xe8   :  { %2824 = vmatpush.bf16.msra.mxu0 %v4689_v33  ;;  %v210_v33 = vsub.f32 %v106_v29, %v146_v41  ;;  %v5364_v41 = vld [vmem:[#allocation8 + $0x748] sm:$0xff] }
  0xe9   :  { %2837 = vmatpush.bf16.msra.mxu1 %v4697_v36  ;;  %v5309_v36 = vld [vmem:[#allocation8 + $0x7a8] sm:$0xff] }
  0xea   :  { %2850 = vmatpush.bf16.msra.mxu2 %v4705_v43  ;;  %v239_v43 = vmul.f32 %v207_v30, %v207_v30  ;;  %v242_v14 = vmul.f32 %v210_v33, %v210_v33 }
  0xeb   :  { %2863 = vmatpush.bf16.msra.mxu3 %v4713_v44 }
  0xec   :  { %2825 = vmatpush.bf16.msra.mxu0 %v4688_v45  ;;  %v240_v45 = vmul.f32 %v208_v31, %v208_v31  ;;  %v5370_v31 = vld [vmem:[#allocation8 + $0x788] sm:$0xff] }
  0xed   :  { %2838 = vmatpush.bf16.msra.mxu1 %v4696_v46  ;;  %v279_v46 = vperm.slane %v5275_v25, 4 }
  0xee   :  { %2851 = vmatpush.bf16.msra.mxu2 %v4704_v49  ;;  %v344_v3 = vmul.f32 %v280_v47, %v240_v45  ;;  %v5380_v47 = vld [vmem:[#allocation8 + $0x740] sm:$0xff] }
  0xef   :  { %2864 = vmatpush.bf16.msra.mxu3 %v4712_v50  ;;  %v5318_v50 = vld [vmem:[#allocation8 + $0x720] sm:$0xff] }
  0xf0   :  { %2826 = vmatpush.bf16.msra.mxu0 %v4687_v53  ;;  %v2620_v44 = vpop.f32.mrf.mxu0  ;;  %v282_v53 = vperm.slane %v5275_v25, 7  ;;  %v345_v25 = vmul.f32 %v281_v2, %v241_v48 }
  0xf1   :  { %2839 = vmatpush.bf16.msra.mxu1 %v4695_v56  ;;  %v2621_v49 = vadd.f32 %v2620_v44, %v5282_v37  ;;  %v2633_v52 = vpop.f32.mrf.mxu1  ;;  %v5326_v56 = vld [vmem:[#allocation8 + $0x7a0] sm:$0xff]  ;;  %v343_v37 = vmul.f32 %v279_v46, %v239_v43 }
  0xf2   :  { %2852 = vmatpush.bf16.msra.mxu2 %v4703_v63  ;;  %v5332_v63 = vld [vmem:[#allocation8 + $0x718] sm:$0xff]  ;;  %v346_v6 = vmul.f32 %v282_v53, %v242_v14  ;;  %v5378_v46 = vld [vmem:[#allocation8 + $0x700] sm:$0xff] }
  0xf3   :  { %2865 = vmatpush.bf16.msra.mxu3 %v4711_v1  ;;  %2827 = vmatmul.bf16.vlgmr.msra.gmra.mxu0 %v451_v11  ;;  %v2634_v62 = vadd.f32 %v2633_v52, %v2621_v49  ;;  %v5334_v1 = vld [vmem:[#allocation8 + $0x758] sm:$0xff]  ;;  %v5384_v52 = vld [vmem:[#allocation8 + $0x780] sm:$0xff] }
  0xf4   :  { %2871 = vmatpush.bf16.msrb.mxu0 %v4726_v7  ;;  %2840 = vmatmul.bf16.vlgmr.msra.gmra.mxu1 %v452_v15  ;;  %v5338_v7 = vld [vmem:[#allocation8 + $0x798] sm:$0xff]  ;;  %v5346_v15 = vld [vmem:[#allocation8 + $0x710] sm:$0xff]  ;;  %v5352_v19 = vpack.c.bf16 %v346_v6, %v345_v25  ;;  %v5386_v14 = vld [vmem:[#allocation8 + $0x7c0] sm:$0xff] }
  0xf5   :  { %2884 = vmatpush.bf16.msrb.mxu1 %v4734_v8  ;;  %2853 = vmatmul.bf16.vlgmr.msra.gmra.mxu2 %v453_v12  ;;  %v5340_v8 = vld [vmem:[#allocation8 + $0x7d8] sm:$0xff] }
  0xf6   :  { %2897 = vmatpush.bf16.msrb.mxu2 %v4742_v9  ;;  %2866 = vmatmul.bf16.vlgmr.msra.gmra.mxu3 %v454_v16  ;;  %v5348_v16 = vld [vmem:[#allocation8 + $0x750] sm:$0xff]  ;;  %v393_v30 = vunpack.c.l.bf16 %v5352_v19  ;;  %v394_v43 = vunpack.c.h.bf16 %v5352_v19 }
  0xf7   :  { %2910 = vmatpush.bf16.msrb.mxu3 %v4750_v10 }
  0xf8   :  { %2872 = vmatpush.bf16.msrb.mxu0 %v4725_v38  ;;  %v2646_v9 = vpop.f32.mrf.mxu2  ;;  %v2622_v12 = vpop.f32.mrf.mxu0  ;;  %v5350_v38 = vpack.c.bf16 %v344_v3, %v343_v37  ;;  %v425_v49 = vsub.f32 %v345_v25, %v393_v30  ;;  %v426_v53 = vsub.f32 %v346_v6, %v394_v43  ;;  %v4762_v6 = vld [vmem:[#allocation8 + $0x30] sm:$0xff]  ;;  %v4766_v43 = vld [vmem:[#allocation8 + $0x28] sm:$0xff] }
  0xf9   :  { %2885 = vmatpush.bf16.msrb.mxu1 %v5295_v22  ;;  %v2647_v10 = vadd.f32 %v2646_v9, %v2634_v62  ;;  %v2659_v11 = vpop.f32.mrf.mxu3  ;;  %v2635_v20 = vpop.f32.mrf.mxu1  ;;  %v4760_v12 = vld [vmem:[#allocation8 + $0xb8] sm:$0xff]  ;;  %v4765_v30 = vld [vmem:[#allocation8 + $0xf0] sm:$0xff] }
  0xfa   :  { %2898 = vmatpush.bf16.msrb.mxu2 %v5298_v28  ;;  %v391_v29 = vunpack.c.l.bf16 %v5350_v38  ;;  %v392_v33 = vunpack.c.h.bf16 %v5350_v38  ;;  %v457_v9 = vpack.c.bf16 %v425_v49, %v425_v49  ;;  %v458_v25 = vpack.c.bf16 %v426_v53, %v426_v53  ;;  %v4763_v20 = vld [vmem:[#allocation8 + $0x70] sm:$0xff]  ;;  %v4768_v49 = vld [vmem:[#allocation8 + $0xa8] sm:$0xff] }
  0xfb   :  { %2911 = vmatpush.bf16.msrb.mxu3 %v5300_v0  ;;  %v5344_v13 = vadd.f32 %v2659_v11, %v2647_v10  ;;  %v4758_v10 = vld [vmem:[#allocation8 + $0x38] sm:$0xff] }
  0xfc   :  { %2873 = vmatpush.bf16.msrb.mxu0 %v5303_v32  ;;  %v423_v48 = vsub.f32 %v343_v37, %v391_v29  ;;  %v424_v2 = vsub.f32 %v344_v3, %v392_v33  ;;  %v4759_v11 = vld [vmem:[#allocation8 + $0x78] sm:$0xff]  ;;  %v4764_v29 = vld [vmem:[#allocation8 + $0xb0] sm:$0xff] }
  0xfd   :  { %2886 = vmatpush.bf16.msrb.mxu1 %v5305_v27  ;;  %v4761_v3 = vld [vmem:[#allocation8 + $0xf8] sm:$0xff] }
  0xfe   :  { %2899 = vmatpush.bf16.msrb.mxu2 %v5309_v36  ;;  %v455_v62 = vpack.c.bf16 %v423_v48, %v423_v48  ;;  %v456_v37 = vpack.c.bf16 %v424_v2, %v424_v2  ;;  %v4769_v2 = vld [vmem:[#allocation8 + $0xe8] sm:$0xff] }
  0xff   :  { %2912 = vmatpush.bf16.msrb.mxu3 %v5311_v42 }
 0x100   :  { %2874 = vmatpush.bf16.msrb.mxu0 %v5318_v50  ;;  %v2648_v44 = vpop.f32.mrf.mxu2 }
 0x101   :  { %2887 = vmatpush.bf16.msrb.mxu1 %v5320_v51  ;;  %v2661_v45 = vpop.f32.mrf.mxu3  ;;  %v4767_v44 = vld [vmem:[#allocation8 + $0x68] sm:$0xff] }
 0x102   :  { %2900 = vmatpush.bf16.msrb.mxu2 %v5326_v56 }
 0x103   :  { %2913 = vmatpush.bf16.msrb.mxu3 %v5328_v57 }
 0x104   :  { %2875 = vmatpush.bf16.msrb.mxu0 %v5332_v63 }
 0x105   :  { %2888 = vmatpush.bf16.msrb.mxu1 %v5334_v1 }
 0x106   :  { %2901 = vmatpush.bf16.msrb.mxu2 %v5338_v7 }
 0x107   :  { %2914 = vmatpush.bf16.msrb.mxu3 %v5340_v8 }
 0x108   :  { %2876 = vmatpush.bf16.msrb.mxu0 %v5346_v15 }
 0x109   :  { %2889 = vmatpush.bf16.msrb.mxu1 %v5348_v16 }
 0x10a   :  { %2902 = vmatpush.bf16.msrb.mxu2 %v5356_v21 }
 0x10b   :  { %2915 = vmatpush.bf16.msrb.mxu3 %v5358_v23 }
 0x10c   :  { %2877 = vmatpush.bf16.msrb.mxu0 %v5362_v26 }
 0x10d   :  { %2890 = vmatpush.bf16.msrb.mxu1 %v5364_v41 }
 0x10e   :  { %2903 = vmatpush.bf16.msrb.mxu2 %v5370_v31 }
 0x10f   :  { %2916 = vmatpush.bf16.msrb.mxu3 %v5372_v24 }
 0x110   :  { %2878 = vmatpush.bf16.msrb.mxu0 %v5378_v46  ;;  %v2672_v33 = vpop.f32.mrf.mxu0 }
 0x111   :  { %2891 = vmatpush.bf16.msrb.mxu1 %v5380_v47  ;;  %v2673_v45 = vadd.f32 %v2672_v33, %v5344_v13  ;;  %v2685_v48 = vpop.f32.mrf.mxu1  ;;  %v4775_v13 = vld [vmem:[#allocation8 + $0x58] sm:$0xff] }
 0x112   :  { %2904 = vmatpush.bf16.msrb.mxu2 %v5384_v52  ;;  %v4777_v33 = vld [vmem:[#allocation8 + $0xd8] sm:$0xff] }
 0x113   :  { %2917 = vmatpush.bf16.msrb.mxu3 %v5386_v14  ;;  %2879 = vmatmul.bf16.vlgmr.msrb.gmra.mxu0 %v455_v62  ;;  %v2686_v53 = vadd.f32 %v2685_v48, %v2673_v45  ;;  %v4770_v62 = vld [vmem:[#allocation8 + $0x20] sm:$0xff]  ;;  %v4780_v45 = vld [vmem:[#allocation8 + $0x90] sm:$0xff] }
 0x114   :  { %3035 = vmatpush.bf16.msra.mxu0 %v4758_v10  ;;  %2892 = vmatmul.bf16.vlgmr.msrb.gmra.mxu1 %v456_v37  ;;  %v4772_v37 = vld [vmem:[#allocation8 + $0xa0] sm:$0xff]  ;;  %v4781_v48 = vld [vmem:[#allocation8 + $0xd0] sm:$0xff] }
 0x115   :  { %3048 = vmatpush.bf16.msra.mxu1 %v4759_v11  ;;  %2905 = vmatmul.bf16.vlgmr.msrb.gmra.mxu2 %v457_v9  ;;  %v4771_v9 = vld [vmem:[#allocation8 + $0x60] sm:$0xff] }
 0x116   :  { %3061 = vmatpush.bf16.msra.mxu2 %v4760_v12  ;;  %2918 = vmatmul.bf16.vlgmr.msrb.gmra.mxu3 %v458_v25  ;;  %v4773_v25 = vld [vmem:[#allocation8 + $0xe0] sm:$0xff] }
 0x117   :  { %3074 = vmatpush.bf16.msra.mxu3 %v4761_v3 }
 0x118   :  { %3036 = vmatpush.bf16.msra.mxu0 %v4762_v6  ;;  %v2698_v10 = vpop.f32.mrf.mxu2  ;;  %v2674_v3 = vpop.f32.mrf.mxu0  ;;  %v4774_v6 = vld [vmem:[#allocation8 + $0x18] sm:$0xff] }
 0x119   :  { %3049 = vmatpush.bf16.msra.mxu1 %v4763_v20  ;;  %v2699_v11 = vadd.f32 %v2698_v10, %v2686_v53  ;;  %v2711_v12 = vpop.f32.mrf.mxu3  ;;  %v4782_v53 = vld [vmem:[#allocation8 + $0x8] sm:$0xff]  ;;  %v4786_v3 = vld [vmem:[#allocation8] sm:$0xff] }
 0x11a   :  { %3062 = vmatpush.bf16.msra.mxu2 %v4764_v29  ;;  %v2687_v29 = vpop.f32.mrf.mxu1  ;;  %v4785_v10 = vld [vmem:[#allocation8 + $0xc8] sm:$0xff] }
 0x11b   :  { %3075 = vmatpush.bf16.msra.mxu3 %v4765_v30  ;;  %v5393_v20 = vadd.f32 %v2711_v12, %v2699_v11  ;;  %v4776_v30 = vld [vmem:[#allocation8 + $0x98] sm:$0xff]  ;;  %v2940_v11 = vunpack.c.h.b16 %v5173_v61  ;;  %v2942_v12 = vunpack.c.h.b16 %v5171_v58 }
 0x11c   :  { %3037 = vmatpush.bf16.msra.mxu0 %v4766_v43  ;;  %v4778_v43 = vld [vmem:[#allocation8 + $0x10] sm:$0xff] }
 0x11d   :  { %3050 = vmatpush.bf16.msra.mxu1 %v4767_v44  ;;  %v4779_v44 = vld [vmem:[#allocation8 + $0x50] sm:$0xff] }
 0x11e   :  { %3063 = vmatpush.bf16.msra.mxu2 %v4768_v49 }
 0x11f   :  { %3076 = vmatpush.bf16.msra.mxu3 %v4769_v2 }
 0x120   :  { %3038 = vmatpush.bf16.msra.mxu0 %v4770_v62  ;;  %v2700_v49 = vpop.f32.mrf.mxu2  ;;  %v4783_v62 = vld [vmem:[#allocation8 + $0x48] sm:$0xff] }
 0x121   :  { %3051 = vmatpush.bf16.msra.mxu1 %v4771_v9  ;;  %v2713_v2 = vpop.f32.mrf.mxu3  ;;  %v2939_v9 = vunpack.c.l.b16 %v5173_v61  ;;  %v4792_v49 = vld [vmem:[#allocation8 + $0x1b8] sm:$0xff] }
 0x122   :  { %3064 = vmatpush.bf16.msra.mxu2 %v4772_v37  ;;  %v2941_v37 = vunpack.c.l.b16 %v5171_v58  ;;  %v4793_v61 = vld [vmem:[#allocation8 + $0x1f8] sm:$0xff]  ;;  %v4794_v58 = vld [vmem:[#allocation8 + $0x130] sm:$0xff] }
 0x123   :  { %3077 = vmatpush.bf16.msra.mxu3 %v4773_v25  ;;  %v4784_v25 = vld [vmem:[#allocation8 + $0x88] sm:$0xff]  ;;  %v4795_v2 = vld [vmem:[#allocation8 + $0x170] sm:$0xff] }
 0x124   :  { %3039 = vmatpush.bf16.msra.mxu0 %v4774_v6  ;;  %v4787_v6 = vld [vmem:[#allocation8 + $0x40] sm:$0xff]  ;;  %v2973_v29 = vpack.c.b16 %v2941_v37, %v2941_v37  ;;  %v4798_v37 = vld [vmem:[#allocation8 + $0x128] sm:$0xff] }
 0x125   :  { %3052 = vmatpush.bf16.msra.mxu1 %v4775_v13  ;;  %v2971_v13 = vpack.c.b16 %v2939_v9, %v2939_v9 }
 0x126   :  { %3065 = vmatpush.bf16.msra.mxu2 %v4776_v30  ;;  %v4788_v30 = vld [vmem:[#allocation8 + $0x80] sm:$0xff] }
 0x127   :  { %3078 = vmatpush.bf16.msra.mxu3 %v4777_v33  ;;  %v4789_v33 = vld [vmem:[#allocation8 + $0xc0] sm:$0xff] }
 0x128   :  { %3040 = vmatpush.bf16.msra.mxu0 %v4778_v43  ;;  %v2972_v43 = vpack.c.b16 %v2940_v11, %v2940_v11 }
 0x129   :  { %3053 = vmatpush.bf16.msra.mxu1 %v4779_v44  ;;  %v2974_v44 = vpack.c.b16 %v2942_v12, %v2942_v12  ;;  %v4800_v12 = vld [vmem:[#allocation8 + $0x1a8] sm:$0xff] }
 0x12a   :  { %3066 = vmatpush.bf16.msra.mxu2 %v4780_v45  ;;  %v4790_v45 = vld [vmem:[#allocation8 + $0x138] sm:$0xff] }
 0x12b   :  { %3079 = vmatpush.bf16.msra.mxu3 %v4781_v48  ;;  %v4791_v48 = vld [vmem:[#allocation8 + $0x178] sm:$0xff] }
 0x12c   :  { %3041 = vmatpush.bf16.msra.mxu0 %v4782_v53  ;;  %v4796_v53 = vld [vmem:[#allocation8 + $0x1b0] sm:$0xff] }
 0x12d   :  { %3054 = vmatpush.bf16.msra.mxu1 %v4783_v62  ;;  %v4797_v62 = vld [vmem:[#allocation8 + $0x1f0] sm:$0xff] }
 0x12e   :  { %3067 = vmatpush.bf16.msra.mxu2 %v4784_v25  ;;  %v4799_v25 = vld [vmem:[#allocation8 + $0x168] sm:$0xff] }
 0x12f   :  { %3080 = vmatpush.bf16.msra.mxu3 %v4785_v10 }
 0x130   :  { %3042 = vmatpush.bf16.msra.mxu0 %v4786_v3  ;;  %v2724_v9 = vpop.f32.mrf.mxu0  ;;  %v4801_v3 = vld [vmem:[#allocation8 + $0x1e8] sm:$0xff] }
 0x131   :  { %3055 = vmatpush.bf16.msra.mxu1 %v4787_v6  ;;  %v2725_v10 = vadd.f32 %v2724_v9, %v5393_v20  ;;  %v2737_v11 = vpop.f32.mrf.mxu1  ;;  %v4807_v20 = vld [vmem:[#allocation8 + $0x158] sm:$0xff]  ;;  %v4811_v9 = vld [vmem:[#allocation8 + $0x150] sm:$0xff] }
 0x132   :  { %3068 = vmatpush.bf16.msra.mxu2 %v4788_v30  ;;  %v4804_v30 = vld [vmem:[#allocation8 + $0x1a0] sm:$0xff] }
 0x133   :  { %3081 = vmatpush.bf16.msra.mxu3 %v4789_v33  ;;  %3043 = vmatmul.bf16.vlgmr.msra.gmra.mxu0 %v2971_v13  ;;  %v2738_v6 = vadd.f32 %v2737_v11, %v2725_v10  ;;  %v4802_v13 = vld [vmem:[#allocation8 + $0x120] sm:$0xff] }
 0x134   :  { %3087 = vmatpush.bf16.msrb.mxu0 %v4790_v45  ;;  %3056 = vmatmul.bf16.vlgmr.msra.gmra.mxu1 %v2972_v43  ;;  %v4805_v33 = vld [vmem:[#allocation8 + $0x1e0] sm:$0xff] }
 0x135   :  { %3100 = vmatpush.bf16.msrb.mxu1 %v4791_v48  ;;  %3069 = vmatmul.bf16.vlgmr.msra.gmra.mxu2 %v2973_v29  ;;  %v4803_v29 = vld [vmem:[#allocation8 + $0x160] sm:$0xff] }
 0x136   :  { %3113 = vmatpush.bf16.msrb.mxu2 %v4792_v49  ;;  %3082 = vmatmul.bf16.vlgmr.msra.gmra.mxu3 %v2974_v44  ;;  %v4806_v49 = vld [vmem:[#allocation8 + $0x118] sm:$0xff] }
 0x137   :  { %3126 = vmatpush.bf16.msrb.mxu3 %v4793_v61 }
 0x138   :  { %3088 = vmatpush.bf16.msrb.mxu0 %v4794_v58  ;;  %v2750_v43 = vpop.f32.mrf.mxu2  ;;  %v2726_v48 = vpop.f32.mrf.mxu0 }
 0x139   :  { %3101 = vmatpush.bf16.msrb.mxu1 %v4795_v2  ;;  %v2751_v44 = vadd.f32 %v2750_v43, %v2738_v6  ;;  %v2763_v45 = vpop.f32.mrf.mxu3  ;;  %v2739_v58 = vpop.f32.mrf.mxu1  ;;  %v4808_v2 = vld [vmem:[#allocation8 + $0x198] sm:$0xff]  ;;  %v2943_v6 = vunpack.c.l.b16 %v5189_v55  ;;  %v2946_v43 = vunpack.c.h.b16 %v5187_v54 }
 0x13a   :  { %3114 = vmatpush.bf16.msrb.mxu2 %v4796_v53  ;;  %v4809_v53 = vld [vmem:[#allocation8 + $0x1d8] sm:$0xff]  ;;  %v4821_v58 = vld [vmem:[#allocation8 + $0x1c0] sm:$0xff] }
 0x13b   :  { %3127 = vmatpush.bf16.msrb.mxu3 %v4797_v62  ;;  %v5400_v61 = vadd.f32 %v2763_v45, %v2751_v44  ;;  %v4810_v62 = vld [vmem:[#allocation8 + $0x110] sm:$0xff]  ;;  %v4818_v44 = vld [vmem:[#allocation8 + $0x100] sm:$0xff]  ;;  %v2975_v48 = vpack.c.b16 %v2943_v6, %v2943_v6  ;;  %v4831_v6 = vld [vmem:[#allocation8 + $0x268] sm:$0xff] }
 0x13c   :  { %3089 = vmatpush.bf16.msrb.mxu0 %v4798_v37  ;;  %v4812_v37 = vld [vmem:[#allocation8 + $0x190] sm:$0xff]  ;;  %v4819_v45 = vld [vmem:[#allocation8 + $0x140] sm:$0xff] }
 0x13d   :  { %3102 = vmatpush.bf16.msrb.mxu1 %v4799_v25  ;;  %v4813_v25 = vld [vmem:[#allocation8 + $0x1d0] sm:$0xff] }
 0x13e   :  { %3115 = vmatpush.bf16.msrb.mxu2 %v4800_v12  ;;  %v4814_v12 = vld [vmem:[#allocation8 + $0x108] sm:$0xff] }
 0x13f   :  { %3128 = vmatpush.bf16.msrb.mxu3 %v4801_v3  ;;  %v4815_v3 = vld [vmem:[#allocation8 + $0x148] sm:$0xff] }
 0x140   :  { %3090 = vmatpush.bf16.msrb.mxu0 %v4802_v13  ;;  %v2752_v10 = vpop.f32.mrf.mxu2  ;;  %v2945_v13 = vunpack.c.l.b16 %v5187_v54  ;;  %v4826_v54 = vld [vmem:[#allocation8 + $0x230] sm:$0xff] }
 0x141   :  { %3103 = vmatpush.bf16.msrb.mxu1 %v4803_v29  ;;  %v2765_v11 = vpop.f32.mrf.mxu3  ;;  %v4816_v29 = vld [vmem:[#allocation8 + $0x188] sm:$0xff]  ;;  %v4828_v10 = vld [vmem:[#allocation8 + $0x2b0] sm:$0xff] }
 0x142   :  { %3116 = vmatpush.bf16.msrb.mxu2 %v4804_v30  ;;  %v4817_v30 = vld [vmem:[#allocation8 + $0x1c8] sm:$0xff]  ;;  %v4829_v11 = vld [vmem:[#allocation8 + $0x2f0] sm:$0xff] }
 0x143   :  { %3129 = vmatpush.bf16.msrb.mxu3 %v4805_v33  ;;  %v2944_v33 = vunpack.c.h.b16 %v5189_v55  ;;  %v4825_v55 = vld [vmem:[#allocation8 + $0x2f8] sm:$0xff] }
 0x144   :  { %3091 = vmatpush.bf16.msrb.mxu0 %v4806_v49  ;;  %v2977_v49 = vpack.c.b16 %v2945_v13, %v2945_v13 }
 0x145   :  { %3104 = vmatpush.bf16.msrb.mxu1 %v4807_v20  ;;  %v4820_v20 = vld [vmem:[#allocation8 + $0x180] sm:$0xff] }
 0x146   :  { %3117 = vmatpush.bf16.msrb.mxu2 %v4808_v2  ;;  %v2976_v2 = vpack.c.b16 %v2944_v33, %v2944_v33  ;;  %v4833_v33 = vld [vmem:[#allocation8 + $0x2e8] sm:$0xff] }
 0x147   :  { %3130 = vmatpush.bf16.msrb.mxu3 %v4809_v53  ;;  %v2978_v53 = vpack.c.b16 %v2946_v43, %v2946_v43 }
 0x148   :  { %3092 = vmatpush.bf16.msrb.mxu0 %v4810_v62  ;;  %v4822_v62 = vld [vmem:[#allocation8 + $0x238] sm:$0xff] }
 0x149   :  { %3105 = vmatpush.bf16.msrb.mxu1 %v4811_v9  ;;  %v4823_v9 = vld [vmem:[#allocation8 + $0x278] sm:$0xff] }
 0x14a   :  { %3118 = vmatpush.bf16.msrb.mxu2 %v4812_v37  ;;  %v4824_v37 = vld [vmem:[#allocation8 + $0x2b8] sm:$0xff] }
 0x14b   :  { %3131 = vmatpush.bf16.msrb.mxu3 %v4813_v25  ;;  %v4827_v25 = vld [vmem:[#allocation8 + $0x270] sm:$0xff] }
 0x14c   :  { %3093 = vmatpush.bf16.msrb.mxu0 %v4814_v12 }
 0x14d   :  { %3106 = vmatpush.bf16.msrb.mxu1 %v4815_v3  ;;  %v4830_v3 = vld [vmem:[#allocation8 + $0x228] sm:$0xff] }
 0x14e   :  { %3119 = vmatpush.bf16.msrb.mxu2 %v4816_v29 }
 0x14f   :  { %3132 = vmatpush.bf16.msrb.mxu3 %v4817_v30  ;;  %v4832_v30 = vld [vmem:[#allocation8 + $0x2a8] sm:$0xff] }
 0x150   :  { %3094 = vmatpush.bf16.msrb.mxu0 %v4818_v44  ;;  %v2776_v12 = vpop.f32.mrf.mxu0  ;;  %v4834_v44 = vld [vmem:[#allocation8 + $0x220] sm:$0xff] }
 0x151   :  { %3107 = vmatpush.bf16.msrb.mxu1 %v4819_v45  ;;  %v2777_v13 = vadd.f32 %v2776_v12, %v5400_v61  ;;  %v2789_v29 = vpop.f32.mrf.mxu1  ;;  %v4835_v45 = vld [vmem:[#allocation8 + $0x260] sm:$0xff]  ;;  %v4839_v61 = vld [vmem:[#allocation8 + $0x258] sm:$0xff]  ;;  %v4845_v12 = vld [vmem:[#allocation8 + $0x2d0] sm:$0xff] }
 0x152   :  { %3120 = vmatpush.bf16.msrb.mxu2 %v4820_v20 }
 0x153   :  { %3133 = vmatpush.bf16.msrb.mxu3 %v4821_v58  ;;  %3095 = vmatmul.bf16.vlgmr.msrb.gmra.mxu0 %v2975_v48  ;;  %v2790_v43 = vadd.f32 %v2789_v29, %v2777_v13  ;;  %v4836_v48 = vld [vmem:[#allocation8 + $0x2a0] sm:$0xff]  ;;  %v4846_v13 = vld [vmem:[#allocation8 + $0x208] sm:$0xff] }
 0x154   :  { %3139 = vmatpush.bf16.msra.mxu0 %v4822_v62  ;;  %3108 = vmatmul.bf16.vlgmr.msrb.gmra.mxu1 %v2976_v2  ;;  %v4838_v62 = vld [vmem:[#allocation8 + $0x218] sm:$0xff]  ;;  %v4847_v29 = vld [vmem:[#allocation8 + $0x248] sm:$0xff] }
 0x155   :  { %3152 = vmatpush.bf16.msra.mxu1 %v4823_v9  ;;  %3121 = vmatmul.bf16.vlgmr.msrb.gmra.mxu2 %v2977_v49  ;;  %v4837_v49 = vld [vmem:[#allocation8 + $0x2e0] sm:$0xff] }
 0x156   :  { %3165 = vmatpush.bf16.msra.mxu2 %v4824_v37  ;;  %3134 = vmatmul.bf16.vlgmr.msrb.gmra.mxu3 %v2978_v53 }
 0x157   :  { %3178 = vmatpush.bf16.msra.mxu3 %v4825_v55  ;;  %v4840_v55 = vld [vmem:[#allocation8 + $0x298] sm:$0xff] }
 0x158   :  { %3140 = vmatpush.bf16.msra.mxu0 %v4826_v54  ;;  %v2802_v20 = vpop.f32.mrf.mxu2  ;;  %v2778_v53 = vpop.f32.mrf.mxu0  ;;  %v4841_v54 = vld [vmem:[#allocation8 + $0x2d8] sm:$0xff] }
 0x159   :  { %3153 = vmatpush.bf16.msra.mxu1 %v4827_v25  ;;  %v2803_v58 = vadd.f32 %v2802_v20, %v2790_v43  ;;  %v2815_v2 = vpop.f32.mrf.mxu3  ;;  %v2791_v37 = vpop.f32.mrf.mxu1  ;;  %v4842_v25 = vld [vmem:[#allocation8 + $0x210] sm:$0xff]  ;;  %v4848_v43 = vld [vmem:[#allocation8 + $0x288] sm:$0xff]  ;;  %v4851_v20 = vld [vmem:[#allocation8 + $0x240] sm:$0xff] }
 0x15a   :  { %3166 = vmatpush.bf16.msra.mxu2 %v4828_v10  ;;  %v4843_v10 = vld [vmem:[#allocation8 + $0x250] sm:$0xff]  ;;  %v4852_v53 = vld [vmem:[#allocation8 + $0x280] sm:$0xff] }
 0x15b   :  { %3179 = vmatpush.bf16.msra.mxu3 %v4829_v11  ;;  %v5407_v9 = vadd.f32 %v2815_v2, %v2803_v58  ;;  %v4844_v11 = vld [vmem:[#allocation8 + $0x290] sm:$0xff] }
 0x15c   :  { %3141 = vmatpush.bf16.msra.mxu0 %v4830_v3 }
 0x15d   :  { %3154 = vmatpush.bf16.msra.mxu1 %v4831_v6 }
 0x15e   :  { %3167 = vmatpush.bf16.msra.mxu2 %v4832_v30  ;;  %v2947_v30 = vunpack.c.l.b16 %v5207_v4 }
 0x15f   :  { %3180 = vmatpush.bf16.msra.mxu3 %v4833_v33  ;;  %v2949_v33 = vunpack.c.l.b16 %v5209_v5 }
 0x160   :  { %3142 = vmatpush.bf16.msra.mxu0 %v4834_v44  ;;  %v2804_v3 = vpop.f32.mrf.mxu2  ;;  %v4849_v44 = vld [vmem:[#allocation8 + $0x2c8] sm:$0xff]  ;;  %v2979_v58 = vpack.c.b16 %v2947_v30, %v2947_v30 }
 0x161   :  { %3155 = vmatpush.bf16.msra.mxu1 %v4835_v45  ;;  %v2817_v6 = vpop.f32.mrf.mxu3  ;;  %v2948_v45 = vunpack.c.h.b16 %v5207_v4  ;;  %v2981_v2 = vpack.c.b16 %v2949_v33, %v2949_v33  ;;  %v4857_v4 = vld [vmem:[#allocation8 + $0x3f8] sm:$0xff]  ;;  %v4864_v33 = vld [vmem:[#allocation8 + $0x3a8] sm:$0xff] }
 0x162   :  { %3168 = vmatpush.bf16.msra.mxu2 %v4836_v48  ;;  %v2950_v48 = vunpack.c.h.b16 %v5209_v5  ;;  %v4858_v5 = vld [vmem:[#allocation8 + $0x330] sm:$0xff]  ;;  %v4862_v6 = vld [vmem:[#allocation8 + $0x328] sm:$0xff] }
 0x163   :  { %3181 = vmatpush.bf16.msra.mxu3 %v4837_v49  ;;  %v4850_v49 = vld [vmem:[#allocation8 + $0x200] sm:$0xff] }
 0x164   :  { %3143 = vmatpush.bf16.msra.mxu0 %v4838_v62  ;;  %v4853_v62 = vld [vmem:[#allocation8 + $0x2c0] sm:$0xff]  ;;  %v2982_v37 = vpack.c.b16 %v2950_v48, %v2950_v48 }
 0x165   :  { %3156 = vmatpush.bf16.msra.mxu1 %v4839_v61  ;;  %v2980_v61 = vpack.c.b16 %v2948_v45, %v2948_v45  ;;  %v4866_v45 = vld [vmem:[#allocation8 + $0x320] sm:$0xff] }
 0x166   :  { %3169 = vmatpush.bf16.msra.mxu2 %v4840_v55  ;;  %v4854_v55 = vld [vmem:[#allocation8 + $0x338] sm:$0xff]  ;;  %v4867_v48 = vld [vmem:[#allocation8 + $0x360] sm:$0xff] }
 0x167   :  { %3182 = vmatpush.bf16.msra.mxu3 %v4841_v54  ;;  %v4855_v54 = vld [vmem:[#allocation8 + $0x378] sm:$0xff] }
 0x168   :  { %3144 = vmatpush.bf16.msra.mxu0 %v4842_v25  ;;  %v4856_v25 = vld [vmem:[#allocation8 + $0x3b8] sm:$0xff] }
 0x169   :  { %3157 = vmatpush.bf16.msra.mxu1 %v4843_v10  ;;  %v4859_v10 = vld [vmem:[#allocation8 + $0x370] sm:$0xff] }
 0x16a   :  { %3170 = vmatpush.bf16.msra.mxu2 %v4844_v11  ;;  %v4860_v11 = vld [vmem:[#allocation8 + $0x3b0] sm:$0xff] }
 0x16b   :  { %3183 = vmatpush.bf16.msra.mxu3 %v4845_v12  ;;  %v4861_v12 = vld [vmem:[#allocation8 + $0x3f0] sm:$0xff] }
 0x16c   :  { %3145 = vmatpush.bf16.msra.mxu0 %v4846_v13  ;;  %v4863_v13 = vld [vmem:[#allocation8 + $0x368] sm:$0xff] }
 0x16d   :  { %3158 = vmatpush.bf16.msra.mxu1 %v4847_v29 }
 0x16e   :  { %3171 = vmatpush.bf16.msra.mxu2 %v4848_v43  ;;  %v4865_v43 = vld [vmem:[#allocation8 + $0x3e8] sm:$0xff] }
 0x16f   :  { %3184 = vmatpush.bf16.msra.mxu3 %v4849_v44 }
 0x170   :  { %3146 = vmatpush.bf16.msra.mxu0 %v4850_v49  ;;  %v2828_v3 = vpop.f32.mrf.mxu0  ;;  %v4868_v49 = vld [vmem:[#allocation8 + $0x3a0] sm:$0xff] }
 0x171   :  { %3159 = vmatpush.bf16.msra.mxu1 %v4851_v20  ;;  %v2829_v29 = vadd.f32 %v2828_v3, %v5407_v9  ;;  %v2841_v30 = vpop.f32.mrf.mxu1  ;;  %v4869_v20 = vld [vmem:[#allocation8 + $0x3e0] sm:$0xff]  ;;  %v4871_v9 = vld [vmem:[#allocation8 + $0x358] sm:$0xff] }
 0x172   :  { %3172 = vmatpush.bf16.msra.mxu2 %v4852_v53 }
 0x173   :  { %3185 = vmatpush.bf16.msra.mxu3 %v4853_v62  ;;  %3147 = vmatmul.bf16.vlgmr.msra.gmra.mxu0 %v2979_v58  ;;  %v2842_v44 = vadd.f32 %v2841_v30, %v2829_v29  ;;  %v2951_v29 = vunpack.c.l.b16 %v5223_v17  ;;  %v2953_v30 = vunpack.c.l.b16 %v5225_v18 }
 0x174   :  { %3191 = vmatpush.bf16.msrb.mxu0 %v4854_v55  ;;  %3160 = vmatmul.bf16.vlgmr.msra.gmra.mxu1 %v2980_v61  ;;  %v4870_v61 = vld [vmem:[#allocation8 + $0x318] sm:$0xff] }
 0x175   :  { %3204 = vmatpush.bf16.msrb.mxu1 %v4855_v54  ;;  %3173 = vmatmul.bf16.vlgmr.msra.gmra.mxu2 %v2981_v2  ;;  %v4872_v54 = vld [vmem:[#allocation8 + $0x398] sm:$0xff] }
 0x176   :  { %3217 = vmatpush.bf16.msrb.mxu2 %v4856_v25  ;;  %3186 = vmatmul.bf16.vlgmr.msra.gmra.mxu3 %v2982_v37  ;;  %v4873_v25 = vld [vmem:[#allocation8 + $0x3d8] sm:$0xff] }
 0x177   :  { %3230 = vmatpush.bf16.msrb.mxu3 %v4857_v4  ;;  %v4874_v4 = vld [vmem:[#allocation8 + $0x310] sm:$0xff] }
 0x178   :  { %3192 = vmatpush.bf16.msrb.mxu0 %v4858_v5  ;;  %v2854_v58 = vpop.f32.mrf.mxu2  ;;  %v2830_v62 = vpop.f32.mrf.mxu0  ;;  %v4875_v5 = vld [vmem:[#allocation8 + $0x350] sm:$0xff] }
 0x179   :  { %3205 = vmatpush.bf16.msrb.mxu1 %v4859_v10  ;;  %v2855_v2 = vadd.f32 %v2854_v58, %v2842_v44  ;;  %v2867_v53 = vpop.f32.mrf.mxu3  ;;  %v2843_v55 = vpop.f32.mrf.mxu1  ;;  %v4876_v10 = vld [vmem:[#allocation8 + $0x390] sm:$0xff]  ;;  %v2952_v44 = vunpack.c.h.b16 %v5223_v17  ;;  %v2985_v58 = vpack.c.b16 %v2953_v30, %v2953_v30  ;;  %v4889_v17 = vld [vmem:[#allocation8 + $0x4f8] sm:$0xff] }
 0x17a   :  { %3218 = vmatpush.bf16.msrb.mxu2 %v4860_v11  ;;  %v4877_v11 = vld [vmem:[#allocation8 + $0x3d0] sm:$0xff]  ;;  %v4887_v55 = vld [vmem:[#allocation8 + $0x478] sm:$0xff] }
 0x17b   :  { %3231 = vmatpush.bf16.msrb.mxu3 %v4861_v12  ;;  %v5414_v37 = vadd.f32 %v2867_v53, %v2855_v2  ;;  %v4884_v2 = vld [vmem:[#allocation8 + $0x380] sm:$0xff]  ;;  %v2984_v62 = vpack.c.b16 %v2952_v44, %v2952_v44 }
 0x17c   :  { %3193 = vmatpush.bf16.msrb.mxu0 %v4862_v6  ;;  %v4878_v6 = vld [vmem:[#allocation8 + $0x308] sm:$0xff]  ;;  %v4885_v53 = vld [vmem:[#allocation8 + $0x3c0] sm:$0xff] }
 0x17d   :  { %3206 = vmatpush.bf16.msrb.mxu1 %v4863_v13  ;;  %v4879_v13 = vld [vmem:[#allocation8 + $0x348] sm:$0xff]  ;;  %v4900_v44 = vld [vmem:[#allocation8 + $0x4a0] sm:$0xff] }
 0x17e   :  { %3219 = vmatpush.bf16.msrb.mxu2 %v4864_v33  ;;  %v4880_v33 = vld [vmem:[#allocation8 + $0x388] sm:$0xff] }
 0x17f   :  { %3232 = vmatpush.bf16.msrb.mxu3 %v4865_v43  ;;  %v4881_v43 = vld [vmem:[#allocation8 + $0x3c8] sm:$0xff] }
 0x180   :  { %3194 = vmatpush.bf16.msrb.mxu0 %v4866_v45  ;;  %v2856_v12 = vpop.f32.mrf.mxu2  ;;  %v2954_v45 = vunpack.c.h.b16 %v5225_v18  ;;  %v4890_v18 = vld [vmem:[#allocation8 + $0x430] sm:$0xff] }
 0x181   :  { %3207 = vmatpush.bf16.msrb.mxu1 %v4867_v48  ;;  %v2869_v3 = vpop.f32.mrf.mxu3  ;;  %v4882_v48 = vld [vmem:[#allocation8 + $0x300] sm:$0xff]  ;;  %v4895_v12 = vld [vmem:[#allocation8 + $0x468] sm:$0xff] }
 0x182   :  { %3220 = vmatpush.bf16.msrb.mxu2 %v4868_v49  ;;  %v4883_v49 = vld [vmem:[#allocation8 + $0x340] sm:$0xff] }
 0x183   :  { %3233 = vmatpush.bf16.msrb.mxu3 %v4869_v20  ;;  %v2983_v20 = vpack.c.b16 %v2951_v29, %v2951_v29  ;;  %v4897_v29 = vld [vmem:[#allocation8 + $0x4e8] sm:$0xff] }
 0x184   :  { %3195 = vmatpush.bf16.msrb.mxu0 %v4870_v61  ;;  %v2986_v61 = vpack.c.b16 %v2954_v45, %v2954_v45  ;;  %v4901_v45 = vld [vmem:[#allocation8 + $0x4e0] sm:$0xff] }
 0x185   :  { %3208 = vmatpush.bf16.msrb.mxu1 %v4871_v9  ;;  %v4886_v9 = vld [vmem:[#allocation8 + $0x438] sm:$0xff] }
 0x186   :  { %3221 = vmatpush.bf16.msrb.mxu2 %v4872_v54  ;;  %v4888_v54 = vld [vmem:[#allocation8 + $0x4b8] sm:$0xff] }
 0x187   :  { %3234 = vmatpush.bf16.msrb.mxu3 %v4873_v25  ;;  %v4891_v25 = vld [vmem:[#allocation8 + $0x470] sm:$0xff] }
 0x188   :  { %3196 = vmatpush.bf16.msrb.mxu0 %v4874_v4  ;;  %v4892_v4 = vld [vmem:[#allocation8 + $0x4b0] sm:$0xff] }
 0x189   :  { %3209 = vmatpush.bf16.msrb.mxu1 %v4875_v5  ;;  %v4893_v5 = vld [vmem:[#allocation8 + $0x4f0] sm:$0xff] }
 0x18a   :  { %3222 = vmatpush.bf16.msrb.mxu2 %v4876_v10 }
 0x18b   :  { %3235 = vmatpush.bf16.msrb.mxu3 %v4877_v11  ;;  %v4894_v11 = vld [vmem:[#allocation8 + $0x428] sm:$0xff] }
 0x18c   :  { %3197 = vmatpush.bf16.msrb.mxu0 %v4878_v6 }
 0x18d   :  { %3210 = vmatpush.bf16.msrb.mxu1 %v4879_v13  ;;  %v4896_v13 = vld [vmem:[#allocation8 + $0x4a8] sm:$0xff] }
 0x18e   :  { %3223 = vmatpush.bf16.msrb.mxu2 %v4880_v33  ;;  %v4898_v33 = vld [vmem:[#allocation8 + $0x420] sm:$0xff] }
 0x18f   :  { %3236 = vmatpush.bf16.msrb.mxu3 %v4881_v43  ;;  %v4899_v43 = vld [vmem:[#allocation8 + $0x460] sm:$0xff] }
 0x190   :  { %3198 = vmatpush.bf16.msrb.mxu0 %v4882_v48  ;;  %v2880_v10 = vpop.f32.mrf.mxu0 }
 0x191   :  { %3211 = vmatpush.bf16.msrb.mxu1 %v4883_v49  ;;  %v2881_v3 = vadd.f32 %v2880_v10, %v5414_v37  ;;  %v2893_v6 = vpop.f32.mrf.mxu1  ;;  %v4903_v37 = vld [vmem:[#allocation8 + $0x458] sm:$0xff]  ;;  %v4911_v10 = vld [vmem:[#allocation8 + $0x448] sm:$0xff] }
 0x192   :  { %3224 = vmatpush.bf16.msrb.mxu2 %v4884_v2  ;;  %v4902_v2 = vld [vmem:[#allocation8 + $0x418] sm:$0xff] }
 0x193   :  { %3237 = vmatpush.bf16.msrb.mxu3 %v4885_v53  ;;  %3199 = vmatmul.bf16.vlgmr.msrb.gmra.mxu0 %v2983_v20  ;;  %v2894_v30 = vadd.f32 %v2893_v6, %v2881_v3  ;;  %v4912_v3 = vld [vmem:[#allocation8 + $0x488] sm:$0xff] }
 0x194   :  { %3243 = vmatpush.bf16.msra.mxu0 %v4886_v9  ;;  %3212 = vmatmul.bf16.vlgmr.msrb.gmra.mxu1 %v2984_v62  ;;  %v4905_v9 = vld [vmem:[#allocation8 + $0x4d8] sm:$0xff]  ;;  %v4913_v6 = vld [vmem:[#allocation8 + $0x4c8] sm:$0xff] }
 0x195   :  { %3256 = vmatpush.bf16.msra.mxu1 %v4887_v55  ;;  %3225 = vmatmul.bf16.vlgmr.msrb.gmra.mxu2 %v2985_v58  ;;  %v4906_v55 = vld [vmem:[#allocation8 + $0x410] sm:$0xff] }
 0x196   :  { %3269 = vmatpush.bf16.msra.mxu2 %v4888_v54  ;;  %3238 = vmatmul.bf16.vlgmr.msrb.gmra.mxu3 %v2986_v61  ;;  %v4904_v61 = vld [vmem:[#allocation8 + $0x498] sm:$0xff]  ;;  %v4907_v54 = vld [vmem:[#allocation8 + $0x450] sm:$0xff] }
 0x197   :  { %3282 = vmatpush.bf16.msra.mxu3 %v4889_v17  ;;  %v4908_v17 = vld [vmem:[#allocation8 + $0x490] sm:$0xff] }
 0x198   :  { %3244 = vmatpush.bf16.msra.mxu0 %v4890_v18  ;;  %v2906_v48 = vpop.f32.mrf.mxu2  ;;  %v2882_v58 = vpop.f32.mrf.mxu0  ;;  %v4909_v18 = vld [vmem:[#allocation8 + $0x4d0] sm:$0xff] }
 0x199   :  { %3257 = vmatpush.bf16.msra.mxu1 %v4891_v25  ;;  %v2907_v49 = vadd.f32 %v2906_v48, %v2894_v30  ;;  %v2919_v20 = vpop.f32.mrf.mxu3  ;;  %v2895_v62 = vpop.f32.mrf.mxu1  ;;  %v4914_v30 = vld [vmem:[#allocation8 + $0x400] sm:$0xff]  ;;  %v4918_v58 = vld [vmem:[#allocation8 + $0x538] sm:$0xff] }
 0x19a   :  { %3270 = vmatpush.bf16.msra.mxu2 %v4892_v4  ;;  %v4917_v48 = vld [vmem:[#allocation8 + $0x4c0] sm:$0xff]  ;;  %v4923_v62 = vld [vmem:[#allocation8 + $0x570] sm:$0xff] }
 0x19b   :  { %3283 = vmatpush.bf16.msra.mxu3 %v4893_v5  ;;  %v5421_v53 = vadd.f32 %v2919_v20, %v2907_v49  ;;  %v4910_v5 = vld [vmem:[#allocation8 + $0x408] sm:$0xff] }
 0x19c   :  { %3245 = vmatpush.bf16.msra.mxu0 %v4894_v11  ;;  %v2955_v11 = vunpack.c.l.b16 %v5243_v34 }
 0x19d   :  { %3258 = vmatpush.bf16.msra.mxu1 %v4895_v12  ;;  %v2957_v12 = vunpack.c.l.b16 %v5245_v35 }
 0x19e   :  { %3271 = vmatpush.bf16.msra.mxu2 %v4896_v13  ;;  %v2956_v13 = vunpack.c.h.b16 %v5243_v34  ;;  %v4921_v34 = vld [vmem:[#allocation8 + $0x5f8] sm:$0xff] }
 0x19f   :  { %3284 = vmatpush.bf16.msra.mxu3 %v4897_v29  ;;  %v2958_v29 = vunpack.c.h.b16 %v5245_v35  ;;  %v4922_v35 = vld [vmem:[#allocation8 + $0x530] sm:$0xff] }
 0x1a0   :  { %3246 = vmatpush.bf16.msra.mxu0 %v4898_v33  ;;  %v2908_v25 = vpop.f32.mrf.mxu2  ;;  %v4915_v33 = vld [vmem:[#allocation8 + $0x440] sm:$0xff]  ;;  %v2988_v49 = vpack.c.b16 %v2956_v13, %v2956_v13 }
 0x1a1   :  { %3259 = vmatpush.bf16.msra.mxu1 %v4899_v43  ;;  %v2921_v4 = vpop.f32.mrf.mxu3  ;;  %v2987_v43 = vpack.c.b16 %v2955_v11, %v2955_v11  ;;  %v2990_v20 = vpack.c.b16 %v2958_v29, %v2958_v29  ;;  %v4930_v11 = vld [vmem:[#allocation8 + $0x520] sm:$0xff] }
 0x1a2   :  { %3272 = vmatpush.bf16.msra.mxu2 %v4900_v44  ;;  %v2989_v44 = vpack.c.b16 %v2957_v12, %v2957_v12  ;;  %v4928_v4 = vld [vmem:[#allocation8 + $0x5a8] sm:$0xff]  ;;  %v4931_v12 = vld [vmem:[#allocation8 + $0x560] sm:$0xff] }
 0x1a3   :  { %3285 = vmatpush.bf16.msra.mxu3 %v4901_v45  ;;  %v4916_v45 = vld [vmem:[#allocation8 + $0x480] sm:$0xff] }
 0x1a4   :  { %3247 = vmatpush.bf16.msra.mxu0 %v4902_v2  ;;  %v4919_v2 = vld [vmem:[#allocation8 + $0x578] sm:$0xff] }
 0x1a5   :  { %3260 = vmatpush.bf16.msra.mxu1 %v4903_v37  ;;  %v4920_v37 = vld [vmem:[#allocation8 + $0x5b8] sm:$0xff] }
 0x1a6   :  { %3273 = vmatpush.bf16.msra.mxu2 %v4904_v61  ;;  %v4924_v61 = vld [vmem:[#allocation8 + $0x5b0] sm:$0xff] }
 0x1a7   :  { %3286 = vmatpush.bf16.msra.mxu3 %v4905_v9  ;;  %v4925_v9 = vld [vmem:[#allocation8 + $0x5f0] sm:$0xff] }
 0x1a8   :  { %3248 = vmatpush.bf16.msra.mxu0 %v4906_v55 }
 0x1a9   :  { %3261 = vmatpush.bf16.msra.mxu1 %v4907_v54  ;;  %v4926_v54 = vld [vmem:[#allocation8 + $0x528] sm:$0xff] }
 0x1aa   :  { %3274 = vmatpush.bf16.msra.mxu2 %v4908_v17  ;;  %v4927_v17 = vld [vmem:[#allocation8 + $0x568] sm:$0xff] }
 0x1ab   :  { %3287 = vmatpush.bf16.msra.mxu3 %v4909_v18 }
 0x1ac   :  { %3249 = vmatpush.bf16.msra.mxu0 %v4910_v5  ;;  %v4929_v5 = vld [vmem:[#allocation8 + $0x5e8] sm:$0xff] }
 0x1ad   :  { %3262 = vmatpush.bf16.msra.mxu1 %v4911_v10 }
 0x1ae   :  { %3275 = vmatpush.bf16.msra.mxu2 %v4912_v3  ;;  %v4932_v3 = vld [vmem:[#allocation8 + $0x5a0] sm:$0xff] }
 0x1af   :  { %3288 = vmatpush.bf16.msra.mxu3 %v4913_v6  ;;  %v4933_v6 = vld [vmem:[#allocation8 + $0x5e0] sm:$0xff] }
 0x1b0   :  { %3250 = vmatpush.bf16.msra.mxu0 %v4914_v30  ;;  %v3044_v55 = vpop.f32.mrf.mxu0 }
 0x1b1   :  { %3263 = vmatpush.bf16.msra.mxu1 %v4915_v33  ;;  %v3045_v18 = vadd.f32 %v3044_v55, %v5421_v53  ;;  %v3057_v25 = vpop.f32.mrf.mxu1  ;;  %v4935_v53 = vld [vmem:[#allocation8 + $0x558] sm:$0xff]  ;;  %v2961_v55 = vunpack.c.l.b16 %v5261_v60 }
 0x1b2   :  { %3276 = vmatpush.bf16.msra.mxu2 %v4916_v45 }
 0x1b3   :  { %3289 = vmatpush.bf16.msra.mxu3 %v4917_v48  ;;  %3251 = vmatmul.bf16.vlgmr.msra.gmra.mxu0 %v2987_v43  ;;  %v3058_v10 = vadd.f32 %v3057_v25, %v3045_v18  ;;  %v4934_v43 = vld [vmem:[#allocation8 + $0x518] sm:$0xff]  ;;  %v2960_v18 = vunpack.c.h.b16 %v5259_v59  ;;  %v2962_v25 = vunpack.c.h.b16 %v5261_v60  ;;  %v4954_v60 = vld [vmem:[#allocation8 + $0x630] sm:$0xff] }
 0x1b4   :  { %3295 = vmatpush.bf16.msrb.mxu0 %v4918_v58  ;;  %3264 = vmatmul.bf16.vlgmr.msra.gmra.mxu1 %v2988_v49  ;;  %v4936_v48 = vld [vmem:[#allocation8 + $0x598] sm:$0xff]  ;;  %v4939_v58 = vld [vmem:[#allocation8 + $0x550] sm:$0xff] }
 0x1b5   :  { %3308 = vmatpush.bf16.msrb.mxu1 %v4919_v2  ;;  %3277 = vmatmul.bf16.vlgmr.msra.gmra.mxu2 %v2989_v44  ;;  %v4937_v49 = vld [vmem:[#allocation8 + $0x5d8] sm:$0xff]  ;;  %v4940_v2 = vld [vmem:[#allocation8 + $0x590] sm:$0xff] }
 0x1b6   :  { %3321 = vmatpush.bf16.msrb.mxu2 %v4920_v37  ;;  %3290 = vmatmul.bf16.vlgmr.msra.gmra.mxu3 %v2990_v20  ;;  %v4938_v20 = vld [vmem:[#allocation8 + $0x510] sm:$0xff] }
 0x1b7   :  { %3334 = vmatpush.bf16.msrb.mxu3 %v4921_v34  ;;  %v4941_v37 = vld [vmem:[#allocation8 + $0x5d0] sm:$0xff] }
 0x1b8   :  { %3296 = vmatpush.bf16.msrb.mxu0 %v4922_v35  ;;  %v3070_v13 = vpop.f32.mrf.mxu2  ;;  %v3046_v33 = vpop.f32.mrf.mxu0 }
 0x1b9   :  { %3309 = vmatpush.bf16.msrb.mxu1 %v4923_v62  ;;  %v3071_v29 = vadd.f32 %v3070_v13, %v3058_v10  ;;  %v3083_v30 = vpop.f32.mrf.mxu3  ;;  %v3059_v45 = vpop.f32.mrf.mxu1  ;;  %v4942_v62 = vld [vmem:[#allocation8 + $0x508] sm:$0xff]  ;;  %v2994_v13 = vpack.c.b16 %v2962_v25, %v2962_v25  ;;  %v4952_v33 = vld [vmem:[#allocation8 + $0x6b8] sm:$0xff] }
 0x1ba   :  { %3322 = vmatpush.bf16.msrb.mxu2 %v4924_v61  ;;  %v4943_v61 = vld [vmem:[#allocation8 + $0x548] sm:$0xff]  ;;  %v4957_v45 = vld [vmem:[#allocation8 + $0x6f0] sm:$0xff] }
 0x1bb   :  { %3335 = vmatpush.bf16.msrb.mxu3 %v4925_v9  ;;  %v5428_v44 = vadd.f32 %v3083_v30, %v3071_v29  ;;  %v2959_v9 = vunpack.c.l.b16 %v5259_v59  ;;  %v4950_v29 = vld [vmem:[#allocation8 + $0x638] sm:$0xff] }
 0x1bc   :  { %3297 = vmatpush.bf16.msrb.mxu0 %v4926_v54  ;;  %v4944_v54 = vld [vmem:[#allocation8 + $0x588] sm:$0xff]  ;;  %v4951_v30 = vld [vmem:[#allocation8 + $0x678] sm:$0xff] }
 0x1bd   :  { %3310 = vmatpush.bf16.msrb.mxu1 %v4927_v17  ;;  %v4945_v17 = vld [vmem:[#allocation8 + $0x5c8] sm:$0xff]  ;;  %v2991_v10 = vpack.c.b16 %v2959_v9, %v2959_v9  ;;  %v4953_v59 = vld [vmem:[#allocation8 + $0x6f8] sm:$0xff]  ;;  %v4964_v9 = vld [vmem:[#allocation8 + $0x6a0] sm:$0xff] }
 0x1be   :  { %3323 = vmatpush.bf16.msrb.mxu2 %v4928_v4  ;;  %v4946_v4 = vld [vmem:[#allocation8 + $0x500] sm:$0xff] }
 0x1bf   :  { %3336 = vmatpush.bf16.msrb.mxu3 %v4929_v5  ;;  %v4947_v5 = vld [vmem:[#allocation8 + $0x540] sm:$0xff] }
 0x1c0   :  { %3298 = vmatpush.bf16.msrb.mxu0 %v4930_v11  ;;  %v3072_v34 = vpop.f32.mrf.mxu2  ;;  %v2993_v11 = vpack.c.b16 %v2961_v55, %v2961_v55  ;;  %v4965_v55 = vld [vmem:[#allocation8 + $0x6e0] sm:$0xff] }
 0x1c1   :  { %3311 = vmatpush.bf16.msrb.mxu1 %v4931_v12  ;;  %v3085_v35 = vpop.f32.mrf.mxu3  ;;  %v4948_v12 = vld [vmem:[#allocation8 + $0x580] sm:$0xff]  ;;  %v4961_v34 = vld [vmem:[#allocation8 + $0x6e8] sm:$0xff] }
 0x1c2   :  { %3324 = vmatpush.bf16.msrb.mxu2 %v4932_v3  ;;  %v4949_v3 = vld [vmem:[#allocation8 + $0x5c0] sm:$0xff] }
 0x1c3   :  { %3337 = vmatpush.bf16.msrb.mxu3 %v4933_v6  ;;  %v2992_v6 = vpack.c.b16 %v2960_v18, %v2960_v18 }
 0x1c4   :  { %3299 = vmatpush.bf16.msrb.mxu0 %v4934_v43  ;;  %v4955_v43 = vld [vmem:[#allocation8 + $0x670] sm:$0xff] }
 0x1c5   :  { %3312 = vmatpush.bf16.msrb.mxu1 %v4935_v53  ;;  %v4956_v53 = vld [vmem:[#allocation8 + $0x6b0] sm:$0xff] }
 0x1c6   :  { %3325 = vmatpush.bf16.msrb.mxu2 %v4936_v48 }
 0x1c7   :  { %3338 = vmatpush.bf16.msrb.mxu3 %v4937_v49  ;;  %v4958_v49 = vld [vmem:[#allocation8 + $0x628] sm:$0xff] }
 0x1c8   :  { %3300 = vmatpush.bf16.msrb.mxu0 %v4938_v20  ;;  %v4959_v20 = vld [vmem:[#allocation8 + $0x668] sm:$0xff] }
 0x1c9   :  { %3313 = vmatpush.bf16.msrb.mxu1 %v4939_v58 }
 0x1ca   :  { %3326 = vmatpush.bf16.msrb.mxu2 %v4940_v2 }
 0x1cb   :  { %3339 = vmatpush.bf16.msrb.mxu3 %v4941_v37  ;;  %v4960_v37 = vld [vmem:[#allocation8 + $0x6a8] sm:$0xff] }
 0x1cc   :  { %3301 = vmatpush.bf16.msrb.mxu0 %v4942_v62  ;;  %v4962_v62 = vld [vmem:[#allocation8 + $0x620] sm:$0xff] }
 0x1cd   :  { %3314 = vmatpush.bf16.msrb.mxu1 %v4943_v61  ;;  %v4963_v61 = vld [vmem:[#allocation8 + $0x660] sm:$0xff] }
 0x1ce   :  { %3327 = vmatpush.bf16.msrb.mxu2 %v4944_v54 }
 0x1cf   :  { %3340 = vmatpush.bf16.msrb.mxu3 %v4945_v17 }
 0x1d0   :  { %3302 = vmatpush.bf16.msrb.mxu0 %v4946_v4  ;;  %v3096_v48 = vpop.f32.mrf.mxu0  ;;  %v4966_v4 = vld [vmem:[#allocation8 + $0x618] sm:$0xff] }
 0x1d1   :  { %3315 = vmatpush.bf16.msrb.mxu1 %v4947_v5  ;;  %v3097_v58 = vadd.f32 %v3096_v48, %v5428_v44  ;;  %v3109_v2 = vpop.f32.mrf.mxu1  ;;  %v4967_v44 = vld [vmem:[#allocation8 + $0x658] sm:$0xff]  ;;  %v4977_v48 = vld [vmem:[#allocation8 + $0x6c8] sm:$0xff] }
 0x1d2   :  { %3328 = vmatpush.bf16.msrb.mxu2 %v4948_v12  ;;  %v4969_v12 = vld [vmem:[#allocation8 + $0x6d8] sm:$0xff] }
 0x1d3   :  { %3341 = vmatpush.bf16.msrb.mxu3 %v4949_v3  ;;  %3303 = vmatmul.bf16.vlgmr.msrb.gmra.mxu0 %v2991_v10  ;;  %v3110_v35 = vadd.f32 %v3109_v2, %v3097_v58  ;;  %v4970_v3 = vld [vmem:[#allocation8 + $0x610] sm:$0xff]  ;;  %v4978_v58 = vld [vmem:[#allocation8 + $0x600] sm:$0xff] }
 0x1d4   :  { %3347 = vmatpush.bf16.msra.mxu0 %v4950_v29  ;;  %3316 = vmatmul.bf16.vlgmr.msrb.gmra.mxu1 %v2992_v6  ;;  %v4971_v6 = vld [vmem:[#allocation8 + $0x650] sm:$0xff]  ;;  %v4979_v2 = vld [vmem:[#allocation8 + $0x640] sm:$0xff] }
 0x1d5   :  { %3360 = vmatpush.bf16.msra.mxu1 %v4951_v30  ;;  %3329 = vmatmul.bf16.vlgmr.msrb.gmra.mxu2 %v2993_v11  ;;  %v4968_v11 = vld [vmem:[#allocation8 + $0x698] sm:$0xff]  ;;  %v4973_v29 = vld [vmem:[#allocation8 + $0x6d0] sm:$0xff] }
 0x1d6   :  { %3373 = vmatpush.bf16.msra.mxu2 %v4952_v33  ;;  %3342 = vmatmul.bf16.vlgmr.msrb.gmra.mxu3 %v2994_v13  ;;  %v4972_v13 = vld [vmem:[#allocation8 + $0x690] sm:$0xff] }
 0x1d7   :  { %3386 = vmatpush.bf16.msra.mxu3 %v4953_v59  ;;  %v4974_v59 = vld [vmem:[#allocation8 + $0x608] sm:$0xff] }
 0x1d8   :  { %3348 = vmatpush.bf16.msra.mxu0 %v4954_v60  ;;  %v3122_v54 = vpop.f32.mrf.mxu2  ;;  %v3098_v25 = vpop.f32.mrf.mxu0  ;;  %v4975_v60 = vld [vmem:[#allocation8 + $0x648] sm:$0xff] }
 0x1d9   :  { %3361 = vmatpush.bf16.msra.mxu1 %v4955_v43  ;;  %v3123_v17 = vadd.f32 %v3122_v54, %v3110_v35  ;;  %v3135_v18 = vpop.f32.mrf.mxu3  ;;  %v3111_v10 = vpop.f32.mrf.mxu1  ;;  %v2963_v43 = vunpack.c.l.b16 %v5284_v39  ;;  %v4980_v35 = vld [vmem:[#allocation8 + $0x680] sm:$0xff]  ;;  %v4983_v54 = vld [vmem:[#allocation8 + $0x778] sm:$0xff] }
 0x1da   :  { %3374 = vmatpush.bf16.msra.mxu2 %v4956_v53  ;;  %v2965_v53 = vunpack.c.l.b16 %v5286_v40 }
 0x1db   :  { %3387 = vmatpush.bf16.msra.mxu3 %v4957_v45  ;;  %v3136_v5 = vadd.f32 %v3135_v18, %v3123_v17  ;;  %v4976_v45 = vld [vmem:[#allocation8 + $0x688] sm:$0xff]  ;;  %v4984_v17 = vld [vmem:[#allocation8 + $0x7b8] sm:$0xff] }
 0x1dc   :  { %3349 = vmatpush.bf16.msra.mxu0 %v4958_v49  ;;  %v2964_v49 = vunpack.c.h.b16 %v5284_v39  ;;  %v4985_v39 = vld [vmem:[#allocation8 + $0x7f8] sm:$0xff] }
 0x1dd   :  { %3362 = vmatpush.bf16.msra.mxu1 %v4959_v20  ;;  %v2966_v20 = vunpack.c.h.b16 %v5286_v40  ;;  %v4986_v40 = vld [vmem:[#allocation8 + $0x730] sm:$0xff] }
 0x1de   :  { %3375 = vmatpush.bf16.msra.mxu2 %v4960_v37  ;;  %v2995_v37 = vpack.c.b16 %v2963_v43, %v2963_v43 }
 0x1df   :  { %3388 = vmatpush.bf16.msra.mxu3 %v4961_v34  ;;  %v2997_v34 = vpack.c.b16 %v2965_v53, %v2965_v53 }
 0x1e0   :  { %3350 = vmatpush.bf16.msra.mxu0 %v4962_v62  ;;  %v3124_v30 = vpop.f32.mrf.mxu2  ;;  %v4981_v62 = vld [vmem:[#allocation8 + $0x6c0] sm:$0xff] }
 0x1e1   :  { %3363 = vmatpush.bf16.msra.mxu1 %v4963_v61  ;;  %v3137_v33 = vpop.f32.mrf.mxu3  ;;  %v2996_v61 = vpack.c.b16 %v2964_v49, %v2964_v49 }
 0x1e2   :  { %3376 = vmatpush.bf16.msra.mxu2 %v4964_v9  ;;  %v2998_v9 = vpack.c.b16 %v2966_v20, %v2966_v20 }
 0x1e3   :  { %3389 = vmatpush.bf16.msra.mxu3 %v4965_v55  ;;  %v4982_v55 = vld [vmem:[#allocation8 + $0x738] sm:$0xff] }
 0x1e4   :  { %3351 = vmatpush.bf16.msra.mxu0 %v4966_v4 }
 0x1e5   :  { %3364 = vmatpush.bf16.msra.mxu1 %v4967_v44 }
 0x1e6   :  { %3377 = vmatpush.bf16.msra.mxu2 %v4968_v11 }
 0x1e7   :  { %3390 = vmatpush.bf16.msra.mxu3 %v4969_v12 }
 0x1e8   :  { %3352 = vmatpush.bf16.msra.mxu0 %v4970_v3 }
 0x1e9   :  { %3365 = vmatpush.bf16.msra.mxu1 %v4971_v6 }
 0x1ea   :  { %3378 = vmatpush.bf16.msra.mxu2 %v4972_v13 }
 0x1eb   :  { %3391 = vmatpush.bf16.msra.mxu3 %v4973_v29 }
 0x1ec   :  { %3353 = vmatpush.bf16.msra.mxu0 %v4974_v59 }
 0x1ed   :  { %3366 = vmatpush.bf16.msra.mxu1 %v4975_v60 }
 0x1ee   :  { %3379 = vmatpush.bf16.msra.mxu2 %v4976_v45 }
 0x1ef   :  { %3392 = vmatpush.bf16.msra.mxu3 %v4977_v48 }
 0x1f0   :  { %3354 = vmatpush.bf16.msra.mxu0 %v4978_v58  ;;  %v3148_v18 = vpop.f32.mrf.mxu0 }
 0x1f1   :  { %3367 = vmatpush.bf16.msra.mxu1 %v4979_v2  ;;  %v3149_v25 = vadd.f32 %v3148_v18, %v3136_v5  ;;  %v3161_v4 = vpop.f32.mrf.mxu1 }
 0x1f2   :  { %3380 = vmatpush.bf16.msra.mxu2 %v4980_v35 }
 0x1f3   :  { %3393 = vmatpush.bf16.msra.mxu3 %v4981_v62  ;;  %3355 = vmatmul.bf16.vlgmr.msra.gmra.mxu0 %v2995_v37  ;;  %v3162_v44 = vadd.f32 %v3161_v4, %v3149_v25 }
 0x1f4   :  { %3399 = vmatpush.bf16.msrb.mxu0 %v4982_v55  ;;  %3368 = vmatmul.bf16.vlgmr.msra.gmra.mxu1 %v2996_v61 }
 0x1f5   :  { %3412 = vmatpush.bf16.msrb.mxu1 %v4983_v54  ;;  %3381 = vmatmul.bf16.vlgmr.msra.gmra.mxu2 %v2997_v34 }
 0x1f6   :  { %3425 = vmatpush.bf16.msrb.mxu2 %v4984_v17  ;;  %3394 = vmatmul.bf16.vlgmr.msra.gmra.mxu3 %v2998_v9 }
 0x1f7   :  { %3438 = vmatpush.bf16.msrb.mxu3 %v4985_v39 }
 0x1f8   :  { %3400 = vmatpush.bf16.msrb.mxu0 %v4986_v40 }
 0x1f9   :  { %3413 = vmatpush.bf16.msrb.mxu1 %v5295_v22  ;;  %v3174_v22 = vpop.f32.mrf.mxu2 }
 0x1fa   :  { %3426 = vmatpush.bf16.msrb.mxu2 %v5298_v28  ;;  %v3175_v28 = vadd.f32 %v3174_v22, %v3162_v44 }
 0x1fb   :  { %3439 = vmatpush.bf16.msrb.mxu3 %v5300_v0  ;;  %v3187_v0 = vpop.f32.mrf.mxu3 }
 0x1fc   :  { %3401 = vmatpush.bf16.msrb.mxu0 %v5303_v32  ;;  %v3150_v32 = vpop.f32.mrf.mxu0 }
 0x1fd   :  { %3414 = vmatpush.bf16.msrb.mxu1 %v5305_v27  ;;  %v3188_v27 = vadd.f32 %v3187_v0, %v3175_v28 }
 0x1fe   :  { %3427 = vmatpush.bf16.msrb.mxu2 %v5309_v36  ;;  %v3163_v36 = vpop.f32.mrf.mxu1 }
 0x1ff   :  { %3440 = vmatpush.bf16.msrb.mxu3 %v5311_v42 }
 0x200   :  { %3402 = vmatpush.bf16.msrb.mxu0 %v5318_v50 }
 0x201   :  { %3415 = vmatpush.bf16.msrb.mxu1 %v5320_v51  ;;  %v3176_v42 = vpop.f32.mrf.mxu2  ;;  %v2967_v51 = vunpack.c.l.b16 %v5350_v38 }
 0x202   :  { %3428 = vmatpush.bf16.msrb.mxu2 %v5326_v56  ;;  %v2968_v56 = vunpack.c.h.b16 %v5350_v38 }
 0x203   :  { %3441 = vmatpush.bf16.msrb.mxu3 %v5328_v57  ;;  %v3189_v50 = vpop.f32.mrf.mxu3  ;;  %v2969_v57 = vunpack.c.l.b16 %v5352_v19 }
 0x204   :  { %3403 = vmatpush.bf16.msrb.mxu0 %v5332_v63  ;;  %v2970_v63 = vunpack.c.h.b16 %v5352_v19 }
 0x205   :  { %3416 = vmatpush.bf16.msrb.mxu1 %v5334_v1  ;;  %v2999_v1 = vpack.c.b16 %v2967_v51, %v2967_v51 }
 0x206   :  { %3429 = vmatpush.bf16.msrb.mxu2 %v5338_v7  ;;  %v3000_v7 = vpack.c.b16 %v2968_v56, %v2968_v56 }
 0x207   :  { %3442 = vmatpush.bf16.msrb.mxu3 %v5340_v8  ;;  %v3001_v8 = vpack.c.b16 %v2969_v57, %v2969_v57 }
 0x208   :  { %3404 = vmatpush.bf16.msrb.mxu0 %v5346_v15  ;;  %v3002_v15 = vpack.c.b16 %v2970_v63, %v2970_v63 }
 0x209   :  { %3417 = vmatpush.bf16.msrb.mxu1 %v5348_v16 }
 0x20a   :  { %3430 = vmatpush.bf16.msrb.mxu2 %v5356_v21 }
 0x20b   :  { %3443 = vmatpush.bf16.msrb.mxu3 %v5358_v23 }
 0x20c   :  { %3405 = vmatpush.bf16.msrb.mxu0 %v5362_v26 }
 0x20d   :  { %3418 = vmatpush.bf16.msrb.mxu1 %v5364_v41 }
 0x20e   :  { %3431 = vmatpush.bf16.msrb.mxu2 %v5370_v31 }
 0x20f   :  { %3444 = vmatpush.bf16.msrb.mxu3 %v5372_v24 }
 0x210   :  { %3406 = vmatpush.bf16.msrb.mxu0 %v5378_v46  ;;  %v3200_v16 = vpop.f32.mrf.mxu0 }
 0x211   :  { %3419 = vmatpush.bf16.msrb.mxu1 %v5380_v47  ;;  %v3201_v38 = vadd.f32 %v3200_v16, %v3188_v27  ;;  %v3213_v19 = vpop.f32.mrf.mxu1 }
 0x212   :  { %3432 = vmatpush.bf16.msrb.mxu2 %v5384_v52 }
 0x213   :  { %3445 = vmatpush.bf16.msrb.mxu3 %v5386_v14  ;;  %3407 = vmatmul.bf16.vlgmr.msrb.gmra.mxu0 %v2999_v1  ;;  %v3214_v21 = vadd.f32 %v3213_v19, %v3201_v38 }
 0x214   :  { %3420 = vmatmul.bf16.vlgmr.msrb.gmra.mxu1 %v3000_v7 }
 0x215   :  { %3433 = vmatmul.bf16.vlgmr.msrb.gmra.mxu2 %v3001_v8 }
 0x216   :  { %3446 = vmatmul.bf16.vlgmr.msrb.gmra.mxu3 %v3002_v15 }
 0x218   :  { %v3226_v23 = vpop.f32.mrf.mxu2  ;;  %v3202_v31 = vpop.f32.mrf.mxu0 }
 0x219   :  { %v3227_v26 = vadd.f32 %v3226_v23, %v3214_v21  ;;  %v3239_v41 = vpop.f32.mrf.mxu3  ;;  %v3215_v46 = vpop.f32.mrf.mxu1 }
 0x21b   :  { %v3240_v24 = vadd.f32 %v3239_v41, %v3227_v26 }
 0x220   :  { %v3228_v47 = vpop.f32.mrf.mxu2 }
 0x221   :  { %v3241_v5 = vpop.f32.mrf.mxu3 }
 0x230   :  { %v3252_v10 = vpop.f32.mrf.mxu0 }
 0x231   :  { %v3253_v52 = vadd.f32 %v3252_v10, %v3240_v24  ;;  %v3265_v11 = vpop.f32.mrf.mxu1 }
 0x233   :  { %v3266_v14 = vadd.f32 %v3265_v11, %v3253_v52 }
 0x238   :  { %v3278_v12 = vpop.f32.mrf.mxu2  ;;  %v3254_v13 = vpop.f32.mrf.mxu0 }
 0x239   :  { %v3279_v3 = vadd.f32 %v3278_v12, %v3266_v14  ;;  %v3291_v6 = vpop.f32.mrf.mxu3  ;;  %v3267_v30 = vpop.f32.mrf.mxu1 }
 0x23b   :  { %v3292_v29 = vadd.f32 %v3291_v6, %v3279_v3 }
 0x240   :  { %v3280_v33 = vpop.f32.mrf.mxu2 }
 0x241   :  { %v3293_v59 = vpop.f32.mrf.mxu3 }
 0x250   :  { %v3304_v60 = vpop.f32.mrf.mxu0 }
 0x251   :  { %v3317_v43 = vpop.f32.mrf.mxu1  ;;  %v3305_v35 = vadd.f32 %v3304_v60, %v3292_v29 }
 0x253   :  { %v3318_v55 = vadd.f32 %v3317_v43, %v3305_v35 }
 0x258   :  { %v3330_v53 = vpop.f32.mrf.mxu2  ;;  %v3306_v48 = vpop.f32.mrf.mxu0 }
 0x259   :  { %v3343_v45 = vpop.f32.mrf.mxu3  ;;  %v3319_v49 = vpop.f32.mrf.mxu1  ;;  %v3331_v54 = vadd.f32 %v3330_v53, %v3318_v55 }
 0x25b   :  { %v3344_v40 = vadd.f32 %v3343_v45, %v3331_v54 }
 0x260   :  { %v3332_v20 = vpop.f32.mrf.mxu2 }
 0x261   :  { %v3345_v58 = vpop.f32.mrf.mxu3 }
 0x270   :  { %v3356_v2 = vpop.f32.mrf.mxu0 }
 0x271   :  { %v3369_v37 = vpop.f32.mrf.mxu1  ;;  %v3357_v18 = vadd.f32 %v3356_v2, %v3344_v40 }
 0x273   :  { %v3370_v25 = vadd.f32 %v3369_v37, %v3357_v18 }
 0x278   :  { %v3382_v34 = vpop.f32.mrf.mxu2  ;;  %v3358_v61 = vpop.f32.mrf.mxu0 }
 0x279   :  { %v3395_v62 = vpop.f32.mrf.mxu3  ;;  %v3371_v9 = vpop.f32.mrf.mxu1  ;;  %v3383_v4 = vadd.f32 %v3382_v34, %v3370_v25 }
 0x27b   :  { %v3396_v44 = vadd.f32 %v3395_v62, %v3383_v4 }
 0x280   :  { %v3384_v17 = vpop.f32.mrf.mxu2 }
 0x281   :  { %v3397_v39 = vpop.f32.mrf.mxu3 }
 0x290   :  { %v3408_v22 = vpop.f32.mrf.mxu0 }
 0x291   :  { %v3421_v28 = vpop.f32.mrf.mxu1  ;;  %v3409_v0 = vadd.f32 %v3408_v22, %v3396_v44 }
 0x293   :  { %v3422_v32 = vadd.f32 %v3421_v28, %v3409_v0 }
 0x298   :  { %v3434_v27 = vpop.f32.mrf.mxu2  ;;  %v3410_v50 = vpop.f32.mrf.mxu0 }
 0x299   :  { %v3447_v36 = vpop.f32.mrf.mxu3  ;;  %v3435_v42 = vadd.f32 %v3434_v27, %v3422_v32  ;;  %v3423_v51 = vpop.f32.mrf.mxu1 }
 0x29b   :  { %v3448_v56 = vadd.f32 %v3447_v36, %v3435_v42 }
 0x29d   :  { %3451 = vst [vmem:[#allocation10] sm:$0xff] %v3448_v56 }
 0x29e   :  { %3462 = dma.vmem_to_hbm [thread:$0]  %s3458_s3, 128, %s3460_s11, [#allocation4]  }
 0x2a0   :  { %v3436_v57 = vpop.f32.mrf.mxu2 }
 0x2a1   :  { %v3449_v63 = vpop.f32.mrf.mxu3 }
 0x2a2   :  { %5113 = dma.done.wait [#allocation4], 128  }
 0x2a3   :  { %5114 = vsyncadd [#allocation4], 4294967168 }
 0x2a4   :  { %3467 = vsyncpa [#allocation3], 1 }
 0x2a5   :  { %3468 = vsyncpa [#allocation6], 1 }
 0x2a6   :  { %3469 = vsyncpa [#allocation9], 1 }
 0x2a7   :  { %3470 = vsyncpa [#allocation4], 1 }

</bundles_post_ra>
